<compile_context>
chip_gen: v6e
topology: v6e:2x2x1
jax: 0.10.0
libtpu: 0.0.40
codegen_flags: <defaults>
</compile_context>

<pallas_src>
import functools

import jax
import jax.numpy as jnp
from jax.experimental import pallas as pl
from jax.experimental.pallas import tpu as pltpu

IN_FEATURES = 28 * 28      # 784
IN_PAD = 896               # 7 * 128  (lane-dense input width; 112 spare lanes)
H1 = 196
H1_PAD = 256               # 2 * 128
H2 = 48
HEAD_H = 16
LATENT = 2
EPS_COL = IN_FEATURES      # eps folded into padding lanes [784:786] of x


# ----------------------------- Pallas kernel --------------------------------
def vae_kernel(
    x_ref,                                   # (TB, 896) bf16: [x | eps | zeros]
    # encoder: Linear(784->196) Tanh Linear(196->48) Tanh           (padded)
    we1_ref, be1_ref, we2_ref, be2_ref,
    # fused mean|logvar heads: (48,32) then block-diagonal (32,4)
    wh1_ref, bh1_ref, wh2_ref, bh2_ref,
    # decoder: Linear(2->16)[VPU] Tanh Linear(16->48) Tanh Linear(48->196) Tanh
    #          Linear(196->784)                                      (padded)
    wd1_ref, bd1_ref, wd2_ref, bd2_ref,
    wd3_ref, bd3_ref, wd4_ref, bd4_ref,
    out_ref,                                 # (TB, 784) f32
):
    def linear_bf16(h, w_ref, b_ref):
        # bf16 operands, f32 MXU accumulation, f32 bias.
        return jnp.dot(h.astype(jnp.bfloat16), w_ref[...],
                       preferred_element_type=jnp.float32) + b_ref[...]

    x = x_ref[...]                                                   # (TB, 896) bf16
    eps = x[:, EPS_COL:EPS_COL + LATENT].astype(jnp.float32)         # (TB, 2)

    # ---- encoder (eps/padding lanes are inert: we1 rows 784:896 are zero) ----
    h = jnp.tanh(linear_bf16(x, we1_ref, be1_ref))                   # (TB, 256)
    h = jnp.tanh(linear_bf16(h, we2_ref, be2_ref))                   # (TB, 48)

    # ---- fused mean / log-variance heads (2 MXU passes instead of 4) ----
    hm = jnp.tanh(linear_bf16(h, wh1_ref, bh1_ref))                  # (TB, 32)
    stats = linear_bf16(hm, wh2_ref, bh2_ref)                        # (TB, 4)
    mean = stats[:, 0:2]                                             # (TB, 2)
    log_variance = stats[:, 2:4]                                     # (TB, 2)

    # ---- reparameterization: z = eps * exp(0.5*logvar) + mean  (VPU/EUP) ----
    std = jnp.exp(0.5 * log_variance)
    z = eps * std + mean                                             # (TB, 2)

    # ---- decoder ----
    # K=2 input layer as VPU broadcast FMAs (skip a nearly-empty MXU pass).
    wd1 = wd1_ref[...]                                               # (2, 16) f32
    d = jnp.tanh(z[:, 0:1] * wd1[0:1, :] + z[:, 1:2] * wd1[1:2, :]
                 + bd1_ref[...])                                     # (TB, 16)
    d = jnp.tanh(linear_bf16(d, wd2_ref, bd2_ref))                   # (TB, 48)
    d = jnp.tanh(linear_bf16(d, wd3_ref, bd3_ref))                   # (TB, 256)
    out_ref[...] = linear_bf16(d, wd4_ref, bd4_ref)                  # (TB, 784) f32


# ------------------------------ wrapper --------------------------------------
@functools.partial(jax.jit, static_argnames=("tile_b",))
def vae_forward(x_nchw, eps, packed_params, *, tile_b=512):
    """x_nchw: (B, 1, 28, 28) f32; eps: (B, 2) f32; packed_params from prepare_params."""
    B = x_nchw.shape[0]
    x_flat = x_nchw.reshape(B, IN_FEATURES)

    # Batch tile: multiple of 8 sublanes.  Ensure >= 2 grid steps whenever
    # B >= 16 so the "parallel" batch axis shards across v7x's 2 TensorCores.
    tile_b = max(8, (int(tile_b) // 8) * 8)
    b_ceil = ((B + 7) // 8) * 8
    if B >= 16:
        half = (((b_ceil + 1) // 2 + 7) // 8) * 8     # ceil(b_ceil/2), rounded to 8
        tile_b = min(tile_b, half)
    else:
        tile_b = min(tile_b, b_ceil)
    n_steps = int(pl.cdiv(b_ceil, tile_b))
    b_pad = n_steps * tile_b

    # Fused zero-pad + bf16 cast; eps folded into two spare padding lanes.
    x_p = (jnp.zeros((b_pad, IN_PAD), jnp.bfloat16)
           .at[:B, :IN_FEATURES].set(x_flat.astype(jnp.bfloat16))
           .at[:B, EPS_COL:EPS_COL + LATENT].set(eps.astype(jnp.bfloat16)))

    def resident_spec(shape):
        # Constant block index -> weights stay VMEM-resident across grid steps.
        return pl.BlockSpec(shape, lambda i: (0, 0))

    in_specs = [pl.BlockSpec((tile_b, IN_PAD), lambda i: (i, 0))]
    in_specs += [resident_spec(p.shape) for p in packed_params]

    out_p = pl.pallas_call(
        vae_kernel,
        out_shape=jax.ShapeDtypeStruct((b_pad, IN_FEATURES), jnp.float32),
        grid=(n_steps,),
        in_specs=in_specs,
        out_specs=pl.BlockSpec((tile_b, IN_FEATURES), lambda i: (i, 0)),
        compiler_params=pltpu.CompilerParams(
            dimension_semantics=("parallel",),
            vmem_limit_bytes=32 << 20,
        ),
    )(x_p, *packed_params)

    # Row slice only (padded rows carry tanh-of-bias garbage); no column slice.
    return out_p[:B].reshape(B, 1, 28, 28)


# --------------------------- parameter init ----------------------------------
def init_linear(key, fan_in, fan_out):
    """PyTorch-style uniform(-1/sqrt(fan_in), 1/sqrt(fan_in)) init.

    Weight stored as (fan_in, fan_out) so the kernel computes x @ W + b.
    Bias stored as (1, fan_out) to keep everything 2-D on TPU.
    """
    kw, kb = jax.random.split(key)
    bound = 1.0 / jnp.sqrt(jnp.float32(fan_in))
    w = jax.random.uniform(kw, (fan_in, fan_out), jnp.float32, -bound, bound)
    b = jax.random.uniform(kb, (1, fan_out), jnp.float32, -bound, bound)
    return w, b


def init_vae_params(key):
    layer_dims = [
        (IN_FEATURES, H1), (H1, H2),                    # encoder
        (H2, HEAD_H), (HEAD_H, LATENT),                 # mean head
        (H2, HEAD_H), (HEAD_H, LATENT),                 # log-variance head
        (LATENT, HEAD_H), (HEAD_H, H2),
        (H2, H1), (H1, IN_FEATURES),                    # decoder
    ]
    keys = jax.random.split(key, len(layer_dims))
    params = []
    for k, (fi, fo) in zip(keys, layer_dims):
        w, b = init_linear(k, fi, fo)
        params += [w, b]
    return params


def _pad2d(a, rows, cols):
    r, c = a.shape
    return jnp.zeros((rows, cols), a.dtype).at[:r, :c].set(a)


def prepare_params(params):
    """Pad to lane multiples, fuse the mean/logvar heads, cast weights to bf16.

    Padded weight rows/columns AND padded bias entries are zero, so tanh(0)=0
    keeps all padding exactly inert.  Biases stay f32 (added post-accumulate).
    """
    (we1, be1, we2, be2,
     wm1, bm1, wm2, bm2,
     wv1, bv1, wv2, bv2,
     wd1, bd1, wd2, bd2, wd3, bd3, wd4, bd4) = params
    bf = jnp.bfloat16

    we1_p = _pad2d(we1, IN_PAD, H1_PAD).astype(bf)              # (896, 256) bf16
    be1_p = _pad2d(be1, 1, H1_PAD)                              # (1, 256) f32, zero pad
    we2_p = _pad2d(we2, H1_PAD, H2).astype(bf)                  # (256, 48) bf16

    wh1 = jnp.concatenate([wm1, wv1], axis=1).astype(bf)        # (48, 32) bf16
    bh1 = jnp.concatenate([bm1, bv1], axis=1)                   # (1, 32) f32
    wh2 = jnp.zeros((2 * HEAD_H, 2 * LATENT), jnp.float32)      # block-diagonal (32, 4)
    wh2 = wh2.at[:HEAD_H, :LATENT].set(wm2).at[HEAD_H:, LATENT:].set(wv2).astype(bf)
    bh2 = jnp.concatenate([bm2, bv2], axis=1)                   # (1, 4) f32

    wd2_b = wd2.astype(bf)                                      # (16, 48) bf16
    wd3_p = _pad2d(wd3, H2, H1_PAD).astype(bf)                  # (48, 256) bf16
    bd3_p = _pad2d(bd3, 1, H1_PAD)                              # (1, 256) f32, zero pad
    wd4_p = _pad2d(wd4, H1_PAD, IN_FEATURES).astype(bf)         # (256, 784) bf16
    # bd4 stays (1, 784) f32 -- output is emitted at 784 columns directly.

    return [we1_p, be1_p, we2_p, be2,
            wh1, bh1, wh2, bh2,
            wd1, bd1, wd2_b, bd2,
            wd3_p, bd3_p, wd4_p, bd4]


# ------------------------- pure-JAX reference ---------------------------------
def vae_reference(x_nchw, eps, params):
    """Mirrors the kernel numerics (bf16 matmul operands, f32 accumulation)."""
    B = x_nchw.shape[0]
    x = x_nchw.reshape(B, IN_FEATURES)
    (we1, be1, we2, be2,
     wm1, bm1, wm2, bm2,
     wv1, bv1, wv2, bv2,
     wd1, bd1, wd2, bd2, wd3, bd3, wd4, bd4) = params
    bf, f32 = jnp.bfloat16, jnp.float32

    def mm(a, w):
        return jnp.dot(a.astype(bf), w.astype(bf), preferred_element_type=f32)

    eps_bf = eps.astype(bf).astype(f32)        # eps travels through bf16 lanes of x
    h = jnp.tanh(mm(x, we1) + be1)
    h = jnp.tanh(mm(h, we2) + be2)
    mean = mm(jnp.tanh(mm(h, wm1) + bm1), wm2) + bm2
    logv = mm(jnp.tanh(mm(h, wv1) + bv1), wv2) + bv2
    z = eps_bf * jnp.exp(0.5 * logv) + mean
    d = jnp.tanh(z @ wd1 + bd1)
    d = jnp.tanh(mm(d, wd2) + bd2)
    d = jnp.tanh(mm(d, wd3) + bd3)
    out = mm(d, wd4) + bd4
    return out.reshape(B, 1, 28, 28)


# ------------------------------- main ----------------------------------------
if __name__ == "__main__":
    key = jax.random.PRNGKey(0)
    k_params, k_x, k_eps = jax.random.split(key, 3)

    B = 32
    params = init_vae_params(k_params)
    packed = prepare_params(params)

    x = jax.random.normal(k_x, (B, 1, 28, 28), jnp.float32)
    eps = jax.random.normal(k_eps, (B, LATENT), jnp.float32)   # reparameterization noise

    # Default tile_b=512 is clamped to 16 here (>=2 grid steps for B=32), so the
    # test exercises a multi-step grid with VMEM-resident weights.
    out = jax.block_until_ready(vae_forward(x, eps, packed))
    ref = jax.block_until_ready(vae_reference(x, eps, params))

    assert out.shape == (B, 1, 28, 28), out.shape
    max_err = float(jnp.max(jnp.abs(out - ref)))
    assert jnp.allclose(out, ref, atol=5e-3, rtol=1e-2), (
        f"mismatch vs JAX reference, max abs err {max_err}")
    print("KERNEL_OK")
</pallas_src>

<mosaic_0001>
module attributes {stable_mosaic.version = 11 : i64} {
  func.func @vae_kernel(%arg0: i32, %arg1: memref<16x896xbf16, #tpu.memory_space<vmem>>, %arg2: memref<896x256xbf16, #tpu.memory_space<vmem>>, %arg3: memref<1x256xf32, #tpu.memory_space<vmem>>, %arg4: memref<256x48xbf16, #tpu.memory_space<vmem>>, %arg5: memref<1x48xf32, #tpu.memory_space<vmem>>, %arg6: memref<48x32xbf16, #tpu.memory_space<vmem>>, %arg7: memref<1x32xf32, #tpu.memory_space<vmem>>, %arg8: memref<32x4xbf16, #tpu.memory_space<vmem>>, %arg9: memref<1x4xf32, #tpu.memory_space<vmem>>, %arg10: memref<2x16xf32, #tpu.memory_space<vmem>>, %arg11: memref<1x16xf32, #tpu.memory_space<vmem>>, %arg12: memref<16x48xbf16, #tpu.memory_space<vmem>>, %arg13: memref<1x48xf32, #tpu.memory_space<vmem>>, %arg14: memref<48x256xbf16, #tpu.memory_space<vmem>>, %arg15: memref<1x256xf32, #tpu.memory_space<vmem>>, %arg16: memref<256x784xbf16, #tpu.memory_space<vmem>>, %arg17: memref<1x784xf32, #tpu.memory_space<vmem>>, %arg18: memref<16x784xf32, #tpu.memory_space<vmem>>) attributes {dimension_semantics = [#tpu.dimension_semantics<parallel>], iteration_bounds = array<i64: 2>, scalar_prefetch = 0 : i64, scratch_operands = 0 : i64, tpu.core_type = #tpu.core_type<tc>, window_params = [{transform_indices = @transform_0, window_bounds = array<i64: 16, 896>}, {pipeline_mode = #tpu.pipeline_mode<synchronous>, transform_indices = @transform_1, window_bounds = array<i64: 896, 256>}, {pipeline_mode = #tpu.pipeline_mode<synchronous>, transform_indices = @transform_2, window_bounds = array<i64: 1, 256>}, {pipeline_mode = #tpu.pipeline_mode<synchronous>, transform_indices = @transform_3, window_bounds = array<i64: 256, 48>}, {pipeline_mode = #tpu.pipeline_mode<synchronous>, transform_indices = @transform_4, window_bounds = array<i64: 1, 48>}, {pipeline_mode = #tpu.pipeline_mode<synchronous>, transform_indices = @transform_5, window_bounds = array<i64: 48, 32>}, {pipeline_mode = #tpu.pipeline_mode<synchronous>, transform_indices = @transform_6, window_bounds = array<i64: 1, 32>}, {pipeline_mode = #tpu.pipeline_mode<synchronous>, transform_indices = @transform_7, window_bounds = array<i64: 32, 4>}, {pipeline_mode = #tpu.pipeline_mode<synchronous>, transform_indices = @transform_8, window_bounds = array<i64: 1, 4>}, {pipeline_mode = #tpu.pipeline_mode<synchronous>, transform_indices = @transform_9, window_bounds = array<i64: 2, 16>}, {pipeline_mode = #tpu.pipeline_mode<synchronous>, transform_indices = @transform_10, window_bounds = array<i64: 1, 16>}, {pipeline_mode = #tpu.pipeline_mode<synchronous>, transform_indices = @transform_11, window_bounds = array<i64: 16, 48>}, {pipeline_mode = #tpu.pipeline_mode<synchronous>, transform_indices = @transform_12, window_bounds = array<i64: 1, 48>}, {pipeline_mode = #tpu.pipeline_mode<synchronous>, transform_indices = @transform_13, window_bounds = array<i64: 48, 256>}, {pipeline_mode = #tpu.pipeline_mode<synchronous>, transform_indices = @transform_14, window_bounds = array<i64: 1, 256>}, {pipeline_mode = #tpu.pipeline_mode<synchronous>, transform_indices = @transform_15, window_bounds = array<i64: 256, 784>}, {pipeline_mode = #tpu.pipeline_mode<synchronous>, transform_indices = @transform_16, window_bounds = array<i64: 1, 784>}, {transform_indices = @transform_17, window_bounds = array<i64: 16, 784>}]} {
    %c0 = arith.constant 0 : index
    %c0_0 = arith.constant 0 : index
    %0 = vector.load %arg1[%c0, %c0_0] : memref<16x896xbf16, #tpu.memory_space<vmem>>, vector<16x896xbf16>
    %1 = vector.extract_strided_slice %0 {offsets = [0, 784], sizes = [16, 2], strides = [1, 1]} : vector<16x896xbf16> to vector<16x2xbf16>
    %2 = arith.extf %1 : vector<16x2xbf16> to vector<16x2xf32>
    %c0_1 = arith.constant 0 : index
    %c0_2 = arith.constant 0 : index
    %3 = vector.load %arg2[%c0_1, %c0_2] : memref<896x256xbf16, #tpu.memory_space<vmem>>, vector<896x256xbf16>
    %cst = arith.constant dense<0.000000e+00> : vector<16x256xf32>
    %4 = tpu.matmul %0, %3, %cst {dimension_numbers = #tpu.dot_dimension_numbers<[1], [0], [0], [1], [0, 0, 1, 1], [], []>} : vector<16x896xbf16>, vector<896x256xbf16>, vector<16x256xf32> -> vector<16x256xf32>
    %c0_3 = arith.constant 0 : index
    %c0_4 = arith.constant 0 : index
    %5 = vector.load %arg3[%c0_3, %c0_4] : memref<1x256xf32, #tpu.memory_space<vmem>>, vector<1x256xf32>
    %6 = vector.broadcast %5 : vector<1x256xf32> to vector<16x256xf32>
    %7 = arith.addf %4, %6 : vector<16x256xf32>
    %8 = math.tanh %7 : vector<16x256xf32>
    %9 = arith.truncf %8 : vector<16x256xf32> to vector<16x256xbf16>
    %c0_5 = arith.constant 0 : index
    %c0_6 = arith.constant 0 : index
    %10 = vector.load %arg4[%c0_5, %c0_6] : memref<256x48xbf16, #tpu.memory_space<vmem>>, vector<256x48xbf16>
    %cst_7 = arith.constant dense<0.000000e+00> : vector<16x48xf32>
    %11 = tpu.matmul %9, %10, %cst_7 {dimension_numbers = #tpu.dot_dimension_numbers<[1], [0], [0], [1], [0, 0, 1, 1], [], []>} : vector<16x256xbf16>, vector<256x48xbf16>, vector<16x48xf32> -> vector<16x48xf32>
    %c0_8 = arith.constant 0 : index
    %c0_9 = arith.constant 0 : index
    %12 = vector.load %arg5[%c0_8, %c0_9] : memref<1x48xf32, #tpu.memory_space<vmem>>, vector<1x48xf32>
    %13 = vector.broadcast %12 : vector<1x48xf32> to vector<16x48xf32>
    %14 = arith.addf %11, %13 : vector<16x48xf32>
    %15 = math.tanh %14 : vector<16x48xf32>
    %16 = arith.truncf %15 : vector<16x48xf32> to vector<16x48xbf16>
    %c0_10 = arith.constant 0 : index
    %c0_11 = arith.constant 0 : index
    %17 = vector.load %arg6[%c0_10, %c0_11] : memref<48x32xbf16, #tpu.memory_space<vmem>>, vector<48x32xbf16>
    %cst_12 = arith.constant dense<0.000000e+00> : vector<16x32xf32>
    %18 = tpu.matmul %16, %17, %cst_12 {dimension_numbers = #tpu.dot_dimension_numbers<[1], [0], [0], [1], [0, 0, 1, 1], [], []>} : vector<16x48xbf16>, vector<48x32xbf16>, vector<16x32xf32> -> vector<16x32xf32>
    %c0_13 = arith.constant 0 : index
    %c0_14 = arith.constant 0 : index
    %19 = vector.load %arg7[%c0_13, %c0_14] : memref<1x32xf32, #tpu.memory_space<vmem>>, vector<1x32xf32>
    %20 = vector.broadcast %19 : vector<1x32xf32> to vector<16x32xf32>
    %21 = arith.addf %18, %20 : vector<16x32xf32>
    %22 = math.tanh %21 : vector<16x32xf32>
    %23 = arith.truncf %22 : vector<16x32xf32> to vector<16x32xbf16>
    %c0_15 = arith.constant 0 : index
    %c0_16 = arith.constant 0 : index
    %24 = vector.load %arg8[%c0_15, %c0_16] : memref<32x4xbf16, #tpu.memory_space<vmem>>, vector<32x4xbf16>
    %cst_17 = arith.constant dense<0.000000e+00> : vector<16x4xf32>
    %25 = tpu.matmul %23, %24, %cst_17 {dimension_numbers = #tpu.dot_dimension_numbers<[1], [0], [0], [1], [0, 0, 1, 1], [], []>} : vector<16x32xbf16>, vector<32x4xbf16>, vector<16x4xf32> -> vector<16x4xf32>
    %c0_18 = arith.constant 0 : index
    %c0_19 = arith.constant 0 : index
    %26 = vector.load %arg9[%c0_18, %c0_19] : memref<1x4xf32, #tpu.memory_space<vmem>>, vector<1x4xf32>
    %27 = vector.broadcast %26 : vector<1x4xf32> to vector<16x4xf32>
    %28 = arith.addf %25, %27 : vector<16x4xf32>
    %29 = vector.extract_strided_slice %28 {offsets = [0, 0], sizes = [16, 2], strides = [1, 1]} : vector<16x4xf32> to vector<16x2xf32>
    %30 = vector.extract_strided_slice %28 {offsets = [0, 2], sizes = [16, 2], strides = [1, 1]} : vector<16x4xf32> to vector<16x2xf32>
    %cst_20 = arith.constant 5.000000e-01 : f32
    %31 = vector.broadcast %cst_20 : f32 to vector<16x2xf32>
    %32 = arith.mulf %31, %30 : vector<16x2xf32>
    %33 = math.exp %32 : vector<16x2xf32>
    %34 = arith.mulf %2, %33 : vector<16x2xf32>
    %35 = arith.addf %34, %29 : vector<16x2xf32>
    %c0_21 = arith.constant 0 : index
    %c0_22 = arith.constant 0 : index
    %36 = vector.load %arg10[%c0_21, %c0_22] : memref<2x16xf32, #tpu.memory_space<vmem>>, vector<2x16xf32>
    %37 = vector.extract_strided_slice %35 {offsets = [0, 0], sizes = [16, 1], strides = [1, 1]} : vector<16x2xf32> to vector<16x1xf32>
    %38 = vector.extract_strided_slice %36 {offsets = [0, 0], sizes = [1, 16], strides = [1, 1]} : vector<2x16xf32> to vector<1x16xf32>
    %39 = vector.broadcast %37 : vector<16x1xf32> to vector<16x16xf32>
    %40 = vector.broadcast %38 : vector<1x16xf32> to vector<16x16xf32>
    %41 = arith.mulf %39, %40 : vector<16x16xf32>
    %42 = vector.extract_strided_slice %35 {offsets = [0, 1], sizes = [16, 1], strides = [1, 1]} : vector<16x2xf32> to vector<16x1xf32>
    %43 = vector.extract_strided_slice %36 {offsets = [1, 0], sizes = [1, 16], strides = [1, 1]} : vector<2x16xf32> to vector<1x16xf32>
    %44 = vector.broadcast %42 : vector<16x1xf32> to vector<16x16xf32>
    %45 = vector.broadcast %43 : vector<1x16xf32> to vector<16x16xf32>
    %46 = arith.mulf %44, %45 : vector<16x16xf32>
    %47 = arith.addf %41, %46 : vector<16x16xf32>
    %c0_23 = arith.constant 0 : index
    %c0_24 = arith.constant 0 : index
    %48 = vector.load %arg11[%c0_23, %c0_24] : memref<1x16xf32, #tpu.memory_space<vmem>>, vector<1x16xf32>
    %49 = vector.broadcast %48 : vector<1x16xf32> to vector<16x16xf32>
    %50 = arith.addf %47, %49 : vector<16x16xf32>
    %51 = math.tanh %50 : vector<16x16xf32>
    %52 = arith.truncf %51 : vector<16x16xf32> to vector<16x16xbf16>
    %c0_25 = arith.constant 0 : index
    %c0_26 = arith.constant 0 : index
    %53 = vector.load %arg12[%c0_25, %c0_26] : memref<16x48xbf16, #tpu.memory_space<vmem>>, vector<16x48xbf16>
    %cst_27 = arith.constant dense<0.000000e+00> : vector<16x48xf32>
    %54 = tpu.matmul %52, %53, %cst_27 {dimension_numbers = #tpu.dot_dimension_numbers<[1], [0], [0], [1], [0, 0, 1, 1], [], []>} : vector<16x16xbf16>, vector<16x48xbf16>, vector<16x48xf32> -> vector<16x48xf32>
    %c0_28 = arith.constant 0 : index
    %c0_29 = arith.constant 0 : index
    %55 = vector.load %arg13[%c0_28, %c0_29] : memref<1x48xf32, #tpu.memory_space<vmem>>, vector<1x48xf32>
    %56 = vector.broadcast %55 : vector<1x48xf32> to vector<16x48xf32>
    %57 = arith.addf %54, %56 : vector<16x48xf32>
    %58 = math.tanh %57 : vector<16x48xf32>
    %59 = arith.truncf %58 : vector<16x48xf32> to vector<16x48xbf16>
    %c0_30 = arith.constant 0 : index
    %c0_31 = arith.constant 0 : index
    %60 = vector.load %arg14[%c0_30, %c0_31] : memref<48x256xbf16, #tpu.memory_space<vmem>>, vector<48x256xbf16>
    %cst_32 = arith.constant dense<0.000000e+00> : vector<16x256xf32>
    %61 = tpu.matmul %59, %60, %cst_32 {dimension_numbers = #tpu.dot_dimension_numbers<[1], [0], [0], [1], [0, 0, 1, 1], [], []>} : vector<16x48xbf16>, vector<48x256xbf16>, vector<16x256xf32> -> vector<16x256xf32>
    %c0_33 = arith.constant 0 : index
    %c0_34 = arith.constant 0 : index
    %62 = vector.load %arg15[%c0_33, %c0_34] : memref<1x256xf32, #tpu.memory_space<vmem>>, vector<1x256xf32>
    %63 = vector.broadcast %62 : vector<1x256xf32> to vector<16x256xf32>
    %64 = arith.addf %61, %63 : vector<16x256xf32>
    %65 = math.tanh %64 : vector<16x256xf32>
    %66 = arith.truncf %65 : vector<16x256xf32> to vector<16x256xbf16>
    %c0_35 = arith.constant 0 : index
    %c0_36 = arith.constant 0 : index
    %67 = vector.load %arg16[%c0_35, %c0_36] : memref<256x784xbf16, #tpu.memory_space<vmem>>, vector<256x784xbf16>
    %cst_37 = arith.constant dense<0.000000e+00> : vector<16x784xf32>
    %68 = tpu.matmul %66, %67, %cst_37 {dimension_numbers = #tpu.dot_dimension_numbers<[1], [0], [0], [1], [0, 0, 1, 1], [], []>} : vector<16x256xbf16>, vector<256x784xbf16>, vector<16x784xf32> -> vector<16x784xf32>
    %c0_38 = arith.constant 0 : index
    %c0_39 = arith.constant 0 : index
    %69 = vector.load %arg17[%c0_38, %c0_39] : memref<1x784xf32, #tpu.memory_space<vmem>>, vector<1x784xf32>
    %70 = vector.broadcast %69 : vector<1x784xf32> to vector<16x784xf32>
    %71 = arith.addf %68, %70 : vector<16x784xf32>
    %c0_40 = arith.constant 0 : index
    %c0_41 = arith.constant 0 : index
    %72 = vector.load %arg18[%c0_40, %c0_41] : memref<16x784xf32, #tpu.memory_space<vmem>>, vector<16x784xf32>
    tpu.vector_store %arg18[%c0_40, %c0_41], %71 {strides = array<i32>} : memref<16x784xf32, #tpu.memory_space<vmem>>, vector<16x784xf32>,
    return
  }
  func.func @transform_0(%arg0: i32) -> (i32, i32) {
    %c0_i32 = arith.constant 0 : i32
    %c0_i32_0 = arith.constant 0 : i32
    return %arg0, %c0_i32 : i32, i32
  }
  func.func @transform_1(%arg0: i32) -> (i32, i32) {
    %c0_i32 = arith.constant 0 : i32
    %c0_i32_0 = arith.constant 0 : i32
    %c0_i32_1 = arith.constant 0 : i32
    return %c0_i32, %c0_i32_0 : i32, i32
  }
  func.func @transform_2(%arg0: i32) -> (i32, i32) {
    %c0_i32 = arith.constant 0 : i32
    %c0_i32_0 = arith.constant 0 : i32
    %c0_i32_1 = arith.constant 0 : i32
    return %c0_i32, %c0_i32_0 : i32, i32
  }
  func.func @transform_3(%arg0: i32) -> (i32, i32) {
    %c0_i32 = arith.constant 0 : i32
    %c0_i32_0 = arith.constant 0 : i32
    %c0_i32_1 = arith.constant 0 : i32
    return %c0_i32, %c0_i32_0 : i32, i32
  }
  func.func @transform_4(%arg0: i32) -> (i32, i32) {
    %c0_i32 = arith.constant 0 : i32
    %c0_i32_0 = arith.constant 0 : i32
    %c0_i32_1 = arith.constant 0 : i32
    return %c0_i32, %c0_i32_0 : i32, i32
  }
  func.func @transform_5(%arg0: i32) -> (i32, i32) {
    %c0_i32 = arith.constant 0 : i32
    %c0_i32_0 = arith.constant 0 : i32
    %c0_i32_1 = arith.constant 0 : i32
    return %c0_i32, %c0_i32_0 : i32, i32
  }
  func.func @transform_6(%arg0: i32) -> (i32, i32) {
    %c0_i32 = arith.constant 0 : i32
    %c0_i32_0 = arith.constant 0 : i32
    %c0_i32_1 = arith.constant 0 : i32
    return %c0_i32, %c0_i32_0 : i32, i32
  }
  func.func @transform_7(%arg0: i32) -> (i32, i32) {
    %c0_i32 = arith.constant 0 : i32
    %c0_i32_0 = arith.constant 0 : i32
    %c0_i32_1 = arith.constant 0 : i32
    return %c0_i32, %c0_i32_0 : i32, i32
  }
  func.func @transform_8(%arg0: i32) -> (i32, i32) {
    %c0_i32 = arith.constant 0 : i32
    %c0_i32_0 = arith.constant 0 : i32
    %c0_i32_1 = arith.constant 0 : i32
    return %c0_i32, %c0_i32_0 : i32, i32
  }
  func.func @transform_9(%arg0: i32) -> (i32, i32) {
    %c0_i32 = arith.constant 0 : i32
    %c0_i32_0 = arith.constant 0 : i32
    %c0_i32_1 = arith.constant 0 : i32
    return %c0_i32, %c0_i32_0 : i32, i32
  }
  func.func @transform_10(%arg0: i32) -> (i32, i32) {
    %c0_i32 = arith.constant 0 : i32
    %c0_i32_0 = arith.constant 0 : i32
    %c0_i32_1 = arith.constant 0 : i32
    return %c0_i32, %c0_i32_0 : i32, i32
  }
  func.func @transform_11(%arg0: i32) -> (i32, i32) {
    %c0_i32 = arith.constant 0 : i32
    %c0_i32_0 = arith.constant 0 : i32
    %c0_i32_1 = arith.constant 0 : i32
    return %c0_i32, %c0_i32_0 : i32, i32
  }
  func.func @transform_12(%arg0: i32) -> (i32, i32) {
    %c0_i32 = arith.constant 0 : i32
    %c0_i32_0 = arith.constant 0 : i32
    %c0_i32_1 = arith.constant 0 : i32
    return %c0_i32, %c0_i32_0 : i32, i32
  }
  func.func @transform_13(%arg0: i32) -> (i32, i32) {
    %c0_i32 = arith.constant 0 : i32
    %c0_i32_0 = arith.constant 0 : i32
    %c0_i32_1 = arith.constant 0 : i32
    return %c0_i32, %c0_i32_0 : i32, i32
  }
  func.func @transform_14(%arg0: i32) -> (i32, i32) {
    %c0_i32 = arith.constant 0 : i32
    %c0_i32_0 = arith.constant 0 : i32
    %c0_i32_1 = arith.constant 0 : i32
    return %c0_i32, %c0_i32_0 : i32, i32
  }
  func.func @transform_15(%arg0: i32) -> (i32, i32) {
    %c0_i32 = arith.constant 0 : i32
    %c0_i32_0 = arith.constant 0 : i32
    %c0_i32_1 = arith.constant 0 : i32
    return %c0_i32, %c0_i32_0 : i32, i32
  }
  func.func @transform_16(%arg0: i32) -> (i32, i32) {
    %c0_i32 = arith.constant 0 : i32
    %c0_i32_0 = arith.constant 0 : i32
    %c0_i32_1 = arith.constant 0 : i32
    return %c0_i32, %c0_i32_0 : i32, i32
  }
  func.func @transform_17(%arg0: i32) -> (i32, i32) {
    %c0_i32 = arith.constant 0 : i32
    %c0_i32_0 = arith.constant 0 : i32
    return %arg0, %c0_i32 : i32, i32
  }
}

</mosaic_0001>

<bundles_post_ra>
// kernel: vae_forward.1
= control target key start
LH: loop header
LB: loop body
LE: loop exit
PB: predicated region body
PF: predicated region fallthrough
CT: control target
= control target key end

     0   :  { %s3896_s24 = smov 0   ;;  %s4773_s0 = inlined_call_operand.vmem [shape: bf16[32,896], index: 0, kind: input, shape index: {}]   ;;  %s4774_s1 = inlined_call_operand.vmem [shape: bf16[896,256], index: 1, kind: input, shape index: {}]   ;;  %s4775_s2 = inlined_call_operand.vmem [shape: f32[1,256], index: 2, kind: input, shape index: {}]   ;;  %s4776_s3 = inlined_call_operand.vmem [shape: bf16[256,48], index: 3, kind: input, shape index: {}]   ;;  %s4777_s4 = inlined_call_operand.vmem [shape: f32[1,48], index: 4, kind: input, shape index: {}]   ;;  %s4778_s5 = inlined_call_operand.vmem [shape: bf16[48,32], index: 5, kind: input, shape index: {}]   ;;  %s4779_s6 = inlined_call_operand.vmem [shape: f32[1,32], index: 6, kind: input, shape index: {}]   ;;  %s4780_s7 = inlined_call_operand.vmem [shape: bf16[32,4], index: 7, kind: input, shape index: {}]   ;;  %s4781_s8 = inlined_call_operand.vmem [shape: f32[1,4], index: 8, kind: input, shape index: {}]   ;;  %s4782_s9 = inlined_call_operand.vmem [shape: f32[2,16], index: 9, kind: input, shape index: {}]   ;;  %s4783_s10 = inlined_call_operand.vmem [shape: f32[1,16], index: 10, kind: input, shape index: {}]   ;;  %s4784_s11 = inlined_call_operand.vmem [shape: bf16[16,48], index: 11, kind: input, shape index: {}]   ;;  %s4785_s12 = inlined_call_operand.vmem [shape: f32[1,48], index: 12, kind: input, shape index: {}]   ;;  %s4786_s13 = inlined_call_operand.vmem [shape: bf16[48,256], index: 13, kind: input, shape index: {}]   ;;  %s4787_s14 = inlined_call_operand.vmem [shape: f32[1,256], index: 14, kind: input, shape index: {}]   ;;  %s4788_s15 = inlined_call_operand.vmem [shape: bf16[256,784], index: 15, kind: input, shape index: {}]   ;;  %s4789_s16 = inlined_call_operand.vmem [shape: f32[1,784], index: 16, kind: input, shape index: {}]   ;;  %s4790_s17 = inlined_call_operand.vmem [shape: f32[32,784], index: 17, kind: output, shape index: {}]  }
   0x1   :  { %4792 = sst [smem:[#allocation2_spill]] %s4773_s0 }
   0x2   :  { %4793 = sst [smem:[#allocation3_spill]] %s4774_s1 }
   0x3 LB: > { %s3009_s25 = sadd.s32 4294967295, %s3797_s24   ;;  %p3013_p0 = scmp.ge.s32.totalorder %s3797_s24, 1  ;;  %s3797_s24 = sphi %s3896_s24, %s27_s24  }
   0x4   : > { %p489_p1 = scmp.lt.s32.totalorder %s3797_s24, 3 }
   0x6   : > { %p490_p2 = pnand %p3013_p0, %p489_p1 }
   0x7   : > { %s4794_s28 = sld [smem:[#allocation3_spill]] (!%p490_p2)  ;;  %s3014_s22 = sshll.u32 (!%p490_p2), %s3009_s25, 1 }
   0x8   : > { %493 = sbr.rel (%p490_p2) target bundleno = 1982 (0x7be), region = 88  ;;  %p544_p3 = scmp.lt.s32.totalorder (!%p490_p2), %s3014_s22, 3 }
   0x9   : > { %s4795_s1 = sld [smem:[#allocation2_spill]] (!%p490_p2)  ;;  %s3804_s18 = smov (!%p490_p2), 14  }
   0xd   : > { %v3386_v0 = vld [vmem:[%s4794_s28 + $0x74] ss:$8 sps:$4 sm:$0xff]   ;;  %v3388_v1 = vld [vmem:[%s4794_s28 + $0x70] ss:$8 sps:$4 sm:$0xff]   ;;  %v3392_v4 = vld [vmem:[%s4794_s28 + $0x64] ss:$8 sps:$4 sm:$0xff]  }
   0xe   : > { %1288 = vmatprep.subr.bf16.mxu0 %v3386_v0  ;;  %v3389_v2 = vld [vmem:[%s4794_s28 + $0x174] ss:$8 sps:$4 sm:$0xff]   ;;  %v3391_v3 = vld [vmem:[%s4794_s28 + $0x170] ss:$8 sps:$4 sm:$0xff]   ;;  %v3394_v5 = vld [vmem:[%s4794_s28 + $0x60] ss:$8 sps:$4 sm:$0xff]  }
   0xf   : > { %1289 = vmatpush1.bf16.msra.mxu0 %v3388_v1  ;;  %1331 = vmatprep.subr.bf16.mxu1 %v3389_v2  ;;  %v3395_v6 = vld [vmem:[%s4794_s28 + $0x164] ss:$8 sps:$4 sm:$0xff]   ;;  %v3397_v7 = vld [vmem:[%s4794_s28 + $0x160] ss:$8 sps:$4 sm:$0xff]   ;;  %v3398_v8 = vld [vmem:[%s4794_s28 + $0x54] ss:$8 sps:$4 sm:$0xff]  }
  0x10   : > { %1332 = vmatpush1.bf16.msra.mxu1 %v3391_v3  ;;  %1290 = vmatprep.subr.bf16.mxu0 %v3392_v4  ;;  %v3400_v9 = vld [vmem:[%s4794_s28 + $0x50] ss:$8 sps:$4 sm:$0xff]   ;;  %v3401_v10 = vld [vmem:[%s4794_s28 + $0x154] ss:$8 sps:$4 sm:$0xff]   ;;  %v3404_v11 = vld [vmem:[%s4794_s28 + $0x44] ss:$8 sps:$4 sm:$0xff]  }
  0x11   : > { %1333 = vmatprep.subr.bf16.mxu1 %v3395_v6  ;;  %v3403_v12 = vld [vmem:[%s4794_s28 + $0x150] ss:$8 sps:$4 sm:$0xff]   ;;  %v3407_v13 = vld [vmem:[%s4794_s28 + $0x144] ss:$8 sps:$4 sm:$0xff]   ;;  %v3406_v14 = vld [vmem:[%s4794_s28 + $0x40] ss:$8 sps:$4 sm:$0xff]  }
  0x12   : > { %v3410_v15 = vld [vmem:[%s4794_s28 + $0x34] ss:$8 sps:$4 sm:$0xff]   ;;  %v3409_v16 = vld [vmem:[%s4794_s28 + $0x140] ss:$8 sps:$4 sm:$0xff]   ;;  %v3412_v18 = vld [vmem:[%s4794_s28 + $0x30] ss:$8 sps:$4 sm:$0xff]  }
  0x13   : > { %1291 = vmatpush1.bf16.msra.mxu0 %v3394_v5  ;;  %v3413_v17 = vld [vmem:[%s4794_s28 + $0x134] ss:$8 sps:$4 sm:$0xff]   ;;  %v3416_v19 = vld [vmem:[%s4794_s28 + $0x24] ss:$8 sps:$4 sm:$0xff]   ;;  %v3415_v20 = vld [vmem:[%s4794_s28 + $0x130] ss:$8 sps:$4 sm:$0xff]  }
  0x14   : > { %1292 = vmatprep.subr.bf16.mxu0 %v3398_v8  ;;  %1334 = vmatpush1.bf16.msra.mxu1 %v3397_v7  ;;  %v3419_v21 = vld [vmem:[%s4794_s28 + $0x124] ss:$8 sps:$4 sm:$0xff]   ;;  %v3418_v22 = vld [vmem:[%s4794_s28 + $0x20] ss:$8 sps:$4 sm:$0xff]   ;;  %v3422_v23 = vld [vmem:[%s4794_s28 + $0x14] ss:$8 sps:$4 sm:$0xff]  }
  0x15   : > { %1335 = vmatprep.subr.bf16.mxu1 %v3401_v10  ;;  %v3421_v24 = vld [vmem:[%s4794_s28 + $0x120] ss:$8 sps:$4 sm:$0xff]   ;;  %v3425_v25 = vld [vmem:[%s4794_s28 + $0x114] ss:$8 sps:$4 sm:$0xff]   ;;  %v3424_v26 = vld [vmem:[%s4794_s28 + $0x10] ss:$8 sps:$4 sm:$0xff]  }
  0x16   : > { %v3428_v27 = vld [vmem:[%s4794_s28 + $0x4] ss:$8 sps:$4 sm:$0xff]   ;;  %v3427_v28 = vld [vmem:[%s4794_s28 + $0x110] ss:$8 sps:$4 sm:$0xff]   ;;  %v3430_v30 = vld [vmem:[%s4794_s28] ss:$8 sps:$4 sm:$0xff]  }
  0x17   : > { %1293 = vmatpush1.bf16.msra.mxu0 %v3400_v9  ;;  %v3431_v29 = vld [vmem:[%s4794_s28 + $0x104] ss:$8 sps:$4 sm:$0xff]   ;;  %v3434_v31 = vld [vmem:[%s4794_s28 + $0xf4] ss:$8 sps:$4 sm:$0xff]   ;;  %v3433_v32 = vld [vmem:[%s4794_s28 + $0x100] ss:$8 sps:$4 sm:$0xff]  }
  0x18   : > { %1294 = vmatprep.subr.bf16.mxu0 %v3404_v11  ;;  %1336 = vmatpush1.bf16.msra.mxu1 %v3403_v12  ;;  %v3437_v33 = vld [vmem:[%s4794_s28 + $0x1f4] ss:$8 sps:$4 sm:$0xff]   ;;  %v3436_v34 = vld [vmem:[%s4794_s28 + $0xf0] ss:$8 sps:$4 sm:$0xff]   ;;  %v3440_v35 = vld [vmem:[%s4794_s28 + $0xe4] ss:$8 sps:$4 sm:$0xff]  }
  0x19   : > { %1337 = vmatprep.subr.bf16.mxu1 %v3407_v13  ;;  %s4797_s22 = smov (!%p544_p3, %s3014_s22), 3  ;;  %v3439_v36 = vld [vmem:[%s4794_s28 + $0x1f0] ss:$8 sps:$4 sm:$0xff]   ;;  %v3443_v37 = vld [vmem:[%s4794_s28 + $0x1e4] ss:$8 sps:$4 sm:$0xff]   ;;  %v3799_v13 = vmov 0  }
  0x1a   : > { %v3442_v38 = vld [vmem:[%s4794_s28 + $0xe0] ss:$8 sps:$4 sm:$0xff]   ;;  %v3446_v39 = vld [vmem:[%s4794_s28 + $0xd4] ss:$8 sps:$4 sm:$0xff]   ;;  %s3365_s20 = smul.u32 28, %s4797_s22  ;;  %vm3801_vm0 = vmmov 0  }
  0x1b   : > { %1295 = vmatpush1.bf16.msra.mxu0 %v3406_v14  ;;  %v3445_v40 = vld [vmem:[%s4794_s28 + $0x1e0] ss:$8 sps:$4 sm:$0xff]   ;;  %v3449_v41 = vld [vmem:[%s4794_s28 + $0x1d4] ss:$8 sps:$4 sm:$0xff]   ;;  %v3448_v42 = vld [vmem:[%s4794_s28 + $0xd0] ss:$8 sps:$4 sm:$0xff]  }
  0x1c   : > { %1296 = vmatprep.subr.bf16.mxu0 %v3410_v15  ;;  %1338 = vmatpush1.bf16.msra.mxu1 %v3409_v16  ;;  %v3452_v43 = vld [vmem:[%s4794_s28 + $0xc4] ss:$8 sps:$4 sm:$0xff]   ;;  %s4044_s21 = scalar_lea.vmem %s4795_s1, %s3365_s20  ;;  %v3451_v44 = vld [vmem:[%s4794_s28 + $0x1d0] ss:$8 sps:$4 sm:$0xff]   ;;  %v3454_v46 = vld [vmem:[%s4794_s28 + $0xc0] ss:$8 sps:$4 sm:$0xff]  }
  0x1d   : > { %1339 = vmatprep.subr.bf16.mxu1 %v3413_v17  ;;  %v3455_v45 = vld [vmem:[%s4794_s28 + $0x1c4] ss:$8 sps:$4 sm:$0xff]   ;;  %v3458_v48 = vld [vmem:[%s4794_s28 + $0xb4] ss:$8 sps:$4 sm:$0xff]   ;;  %v3457_v49 = vld [vmem:[%s4794_s28 + $0x1c0] ss:$8 sps:$4 sm:$0xff]  }
  0x1e   : > { %v3483_v47 = vld [vmem:[%s4044_s21 + $0x4] ss:$28 sps:$4 sm:$0xff]   ;;  %v3461_v50 = vld [vmem:[%s4794_s28 + $0x1b4] ss:$8 sps:$4 sm:$0xff]   ;;  %v3490_v51 = vld [vmem:[%s4044_s21 + $0xc] ss:$28 sps:$4 sm:$0xff]  }
  0x1f   : > { %1297 = vmatpush1.bf16.msra.mxu0 %v3412_v18  ;;  %1320 = vmatprep.mubr.bf16.mxu0 %v3483_v47  ;;  %v3460_v52 = vld [vmem:[%s4794_s28 + $0xb0] ss:$8 sps:$4 sm:$0xff]   ;;  %v3464_v53 = vld [vmem:[%s4794_s28 + $0xa4] ss:$8 sps:$4 sm:$0xff]   ;;  %v3466_v56 = vld [vmem:[%s4794_s28 + $0xa0] ss:$8 sps:$4 sm:$0xff]  }
  0x20   : > { %1298 = vmatprep.subr.bf16.mxu0 %v3416_v19  ;;  %1340 = vmatpush1.bf16.msra.mxu1 %v3415_v20  ;;  %v3463_v54 = vld [vmem:[%s4794_s28 + $0x1b0] ss:$8 sps:$4 sm:$0xff]   ;;  %v3467_v55 = vld [vmem:[%s4794_s28 + $0x1a4] ss:$8 sps:$4 sm:$0xff]   ;;  %v3470_v57 = vld [vmem:[%s4794_s28 + $0x94] ss:$8 sps:$4 sm:$0xff]  }
  0x21   : > { %1341 = vmatprep.subr.bf16.mxu1 %v3419_v21  ;;  %1363 = vmatprep.mubr.bf16.mxu1 %v3490_v51  ;;  %v3469_v58 = vld [vmem:[%s4794_s28 + $0x1a0] ss:$8 sps:$4 sm:$0xff]   ;;  %v3473_v59 = vld [vmem:[%s4794_s28 + $0x194] ss:$8 sps:$4 sm:$0xff]   ;;  %v3472_v60 = vld [vmem:[%s4794_s28 + $0x90] ss:$8 sps:$4 sm:$0xff]  }
  0x22   : > { %v3476_v61 = vld [vmem:[%s4794_s28 + $0x84] ss:$8 sps:$4 sm:$0xff]   ;;  %v3475_v62 = vld [vmem:[%s4794_s28 + $0x190] ss:$8 sps:$4 sm:$0xff]   ;;  %v3478_v0 = vld [vmem:[%s4794_s28 + $0x80] ss:$8 sps:$4 sm:$0xff]  }
  0x23   : > { %1299 = vmatpush1.bf16.msra.mxu0 %v3418_v22  ;;  %v3479_v63 = vld [vmem:[%s4794_s28 + $0x184] ss:$8 sps:$4 sm:$0xff]   ;;  %v3487_v1 = vld [vmem:[%s4794_s28 + $0x274] ss:$8 sps:$4 sm:$0xff]   ;;  %v3484_v2 = vld [vmem:[%s4794_s28 + $0x180] ss:$8 sps:$4 sm:$0xff]  }
  0x24   : > { %1300 = vmatprep.subr.bf16.mxu0 %v3422_v23  ;;  %1342 = vmatpush1.bf16.msra.mxu1 %v3421_v24  ;;  %v3481_v3 = vld [vmem:[%s4044_s21] ss:$28 sps:$4 sm:$0xff]   ;;  %v3485_v5 = vld [vmem:[%s4794_s28 + $0x270] ss:$8 sps:$4 sm:$0xff]   ;;  %v3488_v6 = vld [vmem:[%s4044_s21 + $0x8] ss:$28 sps:$4 sm:$0xff]  }
  0x25   : > { %1343 = vmatprep.subr.bf16.mxu1 %v3425_v25  ;;  %v3514_v4 = vld [vmem:[%s4794_s28 + $0x374] ss:$8 sps:$4 sm:$0xff]   ;;  %v3493_v7 = vld [vmem:[%s4794_s28 + $0x264] ss:$8 sps:$4 sm:$0xff]   ;;  %v3512_v8 = vld [vmem:[%s4794_s28 + $0x370] ss:$8 sps:$4 sm:$0xff]  }
  0x26   : > { %v3520_v9 = vld [vmem:[%s4794_s28 + $0x364] ss:$8 sps:$4 sm:$0xff]   ;;  %v3491_v10 = vld [vmem:[%s4794_s28 + $0x260] ss:$8 sps:$4 sm:$0xff]   ;;  %v3496_v11 = vld [vmem:[%s4794_s28 + $0x254] ss:$8 sps:$4 sm:$0xff]  }
  0x27   : > { %1301 = vmatpush1.bf16.msra.mxu0 %v3424_v26  ;;  %v3518_v12 = vld [vmem:[%s4794_s28 + $0x360] ss:$8 sps:$4 sm:$0xff]   ;;  %v3526_v14 = vld [vmem:[%s4794_s28 + $0x354] ss:$8 sps:$4 sm:$0xff]   ;;  %v3494_v15 = vld [vmem:[%s4794_s28 + $0x250] ss:$8 sps:$4 sm:$0xff]  }
  0x28   : > { %1302 = vmatprep.subr.bf16.mxu0 %v3428_v27  ;;  %1344 = vmatpush1.bf16.msra.mxu1 %v3427_v28  ;;  %v3499_v16 = vld [vmem:[%s4794_s28 + $0x244] ss:$8 sps:$4 sm:$0xff]   ;;  %v3524_v17 = vld [vmem:[%s4794_s28 + $0x350] ss:$8 sps:$4 sm:$0xff]   ;;  %v3497_v19 = vld [vmem:[%s4794_s28 + $0x240] ss:$8 sps:$4 sm:$0xff]  }
  0x29   : > { %1345 = vmatprep.subr.bf16.mxu1 %v3431_v29  ;;  %v3532_v18 = vld [vmem:[%s4794_s28 + $0x344] ss:$8 sps:$4 sm:$0xff]   ;;  %v3502_v20 = vld [vmem:[%s4794_s28 + $0x234] ss:$8 sps:$4 sm:$0xff]   ;;  %v3500_v21 = vld [vmem:[%s4794_s28 + $0x230] ss:$8 sps:$4 sm:$0xff]  }
  0x2a   : > { %v3530_v22 = vld [vmem:[%s4794_s28 + $0x340] ss:$8 sps:$4 sm:$0xff]   ;;  %v3505_v23 = vld [vmem:[%s4794_s28 + $0x224] ss:$8 sps:$4 sm:$0xff]   ;;  %v3538_v24 = vld [vmem:[%s4794_s28 + $0x334] ss:$8 sps:$4 sm:$0xff]  }
  0x2b   : > { %1303 = vmatpush1.bf16.msra.mxu0 %v3430_v30  ;;  %v3536_v25 = vld [vmem:[%s4794_s28 + $0x330] ss:$8 sps:$4 sm:$0xff]   ;;  %v3544_v27 = vld [vmem:[%s4794_s28 + $0x324] ss:$8 sps:$4 sm:$0xff]   ;;  %v3503_v28 = vld [vmem:[%s4794_s28 + $0x220] ss:$8 sps:$4 sm:$0xff]  }
  0x2c   : > { %1304 = vmatprep.subr.bf16.mxu0 %v3434_v31  ;;  %1346 = vmatpush1.bf16.msra.mxu1 %v3433_v32  ;;  %v3563_v26 = vld [vmem:[%s4044_s21 + $0x14] ss:$28 sps:$4 sm:$0xff]   ;;  %v3542_v30 = vld [vmem:[%s4794_s28 + $0x320] ss:$8 sps:$4 sm:$0xff]   ;;  %v3535_v47 = vld [vmem:[%s4794_s28 + $0x2c4] ss:$8 sps:$4 sm:$0xff]  }
  0x2d   : > { %1347 = vmatprep.subr.bf16.mxu1 %v3437_v33  ;;  %v3508_v29 = vld [vmem:[%s4794_s28 + $0x214] ss:$8 sps:$4 sm:$0xff]   ;;  %v3506_v32 = vld [vmem:[%s4794_s28 + $0x210] ss:$8 sps:$4 sm:$0xff]   ;;  %v3511_v33 = vld [vmem:[%s4794_s28 + $0x204] ss:$8 sps:$4 sm:$0xff]  }
  0x2e   : > { %v3550_v31 = vld [vmem:[%s4794_s28 + $0x314] ss:$8 sps:$4 sm:$0xff]   ;;  %v3547_v51 = vld [vmem:[%s4794_s28 + $0x2a4] ss:$8 sps:$4 sm:$0xff]   ;;  %vm1676_vm1 = vcmask 392192   ;;  %vm1747_vm2 = vcmask 261120  }
  0x2f   : > { %1305 = vmatpush2.bf16.msra.mxu0 %v3436_v34  ;;  %v3548_v34 = vld [vmem:[%s4794_s28 + $0x310] ss:$8 sps:$4 sm:$0xff]   ;;  %s3802_s20 = smov 16   ;;  %vm1878_vm3 = vcmask 130048   ;;  %s3366_s0 = smul.u32 56, %s4797_s22 }
  0x30   : > { %1306 = vmatprep.subr.bf16.mxu0 %v3440_v35  ;;  %1348 = vmatpush2.bf16.msra.mxu1 %v3439_v36  ;;  %v3556_v35 = vld [vmem:[%s4794_s28 + $0x304] ss:$8 sps:$4 sm:$0xff]   ;;  %v3509_v36 = vld [vmem:[%s4794_s28 + $0x200] ss:$8 sps:$4 sm:$0xff]  }
  0x31   : > { %1349 = vmatprep.subr.bf16.mxu1 %v3443_v37  ;;  %v3517_v37 = vld [vmem:[%s4794_s28 + $0x2f4] ss:$8 sps:$4 sm:$0xff]  }
  0x33   : > { %1307 = vmatpush2.bf16.msra.mxu0 %v3442_v38  ;;  %v3554_v38 = vld [vmem:[%s4794_s28 + $0x300] ss:$8 sps:$4 sm:$0xff]  }
  0x34   : > { %1308 = vmatprep.subr.bf16.mxu0 %v3446_v39  ;;  %1350 = vmatpush2.bf16.msra.mxu1 %v3445_v40  ;;  %v4212_v39 = vld [vmem:[%s4044_s21 + $0x18] sm:$0xf]  ;;  %v4215_v40 = vld [vmem:[%s4044_s21 + $0x34] sm:$0xf] }
  0x35   : > { %1351 = vmatprep.subr.bf16.mxu1 %v3449_v41  ;;  %v3515_v41 = vld [vmem:[%s4794_s28 + $0x2f0] ss:$8 sps:$4 sm:$0xff]  }
  0x37   : > { %1309 = vmatpush2.bf16.msra.mxu0 %v3448_v42  ;;  %v3523_v42 = vld [vmem:[%s4794_s28 + $0x2e4] ss:$8 sps:$4 sm:$0xff]  }
  0x38   : > { %1310 = vmatprep.subr.bf16.mxu0 %v3452_v43  ;;  %1352 = vmatpush2.bf16.msra.mxu1 %v3451_v44  ;;  %v3024_v43 = vcombine.low %v4212_v39, %v4215_v40  ;;  %v3521_v44 = vld [vmem:[%s4794_s28 + $0x2e0] ss:$8 sps:$4 sm:$0xff]  }
  0x39   : > { %1353 = vmatprep.subr.bf16.mxu1 %v3455_v45  ;;  %v3529_v45 = vld [vmem:[%s4794_s28 + $0x2d4] ss:$8 sps:$4 sm:$0xff]  }
  0x3b   : > { %1311 = vmatpush2.bf16.msra.mxu0 %v3454_v46  ;;  %v3527_v46 = vld [vmem:[%s4794_s28 + $0x2d0] ss:$8 sps:$4 sm:$0xff]  }
  0x3c   : > { %1312 = vmatprep.subr.bf16.mxu0 %v3458_v48  ;;  %1354 = vmatpush2.bf16.msra.mxu1 %v3457_v49  ;;  %v3533_v48 = vld [vmem:[%s4794_s28 + $0x2c0] ss:$8 sps:$4 sm:$0xff]   ;;  %v3541_v49 = vld [vmem:[%s4794_s28 + $0x2b4] ss:$8 sps:$4 sm:$0xff]  }
  0x3d   : > { %1355 = vmatprep.subr.bf16.mxu1 %v3461_v50  ;;  %v3539_v50 = vld [vmem:[%s4794_s28 + $0x2b0] ss:$8 sps:$4 sm:$0xff]  }
  0x3f   : > { %1313 = vmatpush2.bf16.msra.mxu0 %v3460_v52  ;;  %v3545_v52 = vld [vmem:[%s4794_s28 + $0x2a0] ss:$8 sps:$4 sm:$0xff]  }
  0x40   : > { %1314 = vmatprep.subr.bf16.mxu0 %v3464_v53  ;;  %1356 = vmatpush2.bf16.msra.mxu1 %v3463_v54  ;;  %v3553_v53 = vld [vmem:[%s4794_s28 + $0x294] ss:$8 sps:$4 sm:$0xff]   ;;  %v3551_v54 = vld [vmem:[%s4794_s28 + $0x290] ss:$8 sps:$4 sm:$0xff]  }
  0x41   : > { %1357 = vmatprep.subr.bf16.mxu1 %v3467_v55  ;;  %v3559_v55 = vld [vmem:[%s4794_s28 + $0x284] ss:$8 sps:$4 sm:$0xff]  }
  0x43   : > { %1315 = vmatpush2.bf16.msra.mxu0 %v3466_v56  ;;  %v3557_v56 = vld [vmem:[%s4794_s28 + $0x280] ss:$8 sps:$4 sm:$0xff]  }
  0x44   : > { %1316 = vmatprep.subr.bf16.mxu0 %v3470_v57  ;;  %1358 = vmatpush2.bf16.msra.mxu1 %v3469_v58  ;;  %v3561_v57 = vld [vmem:[%s4044_s21 + $0x10] ss:$28 sps:$4 sm:$0xff]   ;;  %v3564_v58 = vld [vmem:[%s4776_s3 + $0x78] sm:$0xff]  }
  0x45   : > { %1359 = vmatprep.subr.bf16.mxu1 %v3473_v59  ;;  %v3565_v59 = vld [vmem:[%s4776_s3 + $0x38] sm:$0xff]  }
  0x47   : > { %1317 = vmatpush2.bf16.msra.mxu0 %v3472_v60  ;;  %v3566_v60 = vld [vmem:[%s4776_s3 + $0x70] sm:$0xff]  }
  0x48   : > { %1318 = vmatprep.subr.bf16.mxu0 %v3476_v61  ;;  %1360 = vmatpush2.bf16.msra.mxu1 %v3475_v62  ;;  %v3567_v61 = vld [vmem:[%s4776_s3 + $0x30] sm:$0xff]   ;;  %v3568_v62 = vld [vmem:[%s4776_s3 + $0x68] sm:$0xff]  }
  0x49   : > { %1361 = vmatprep.subr.bf16.mxu1 %v3479_v63  ;;  %v3569_v63 = vld [vmem:[%s4776_s3 + $0x28] sm:$0xff]  }
  0x4b   : > { %1319 = vmatpush2.bf16.msra.mxu0 %v3478_v0  ;;  %v3570_v0 = vld [vmem:[%s4776_s3 + $0x60] sm:$0xff]  }
  0x4c   : > { %1374 = vmatprep.subr.bf16.mxu0 %v3487_v1  ;;  %1362 = vmatpush2.bf16.msra.mxu1 %v3484_v2  ;;  %v3571_v1 = vld [vmem:[%s4776_s3 + $0x20] sm:$0xff]   ;;  %v3572_v2 = vld [vmem:[%s4776_s3 + $0x58] sm:$0xff]  }
  0x4d   : > { %1417 = vmatprep.subr.bf16.mxu1 %v3514_v4  ;;  %v3574_v4 = vld [vmem:[%s4776_s3 + $0x50] sm:$0xff]  }
  0x4e   : > { %1321 = vmatmul.mubr.bf16.vlgmr.msra.gmra.mxu0 %v3481_v3  ;;  %v3573_v3 = vld [vmem:[%s4776_s3 + $0x18] sm:$0xff]  }
  0x4f   : > { %1375 = vmatpush1.bf16.msra.mxu0 %v3485_v5  ;;  %1364 = vmatmul.mubr.bf16.vlgmr.msra.gmra.mxu1 %v3488_v6  ;;  %v3575_v5 = vld [vmem:[%s4776_s3 + $0x10] sm:$0xff]   ;;  %v3576_v6 = vld [vmem:[%s4776_s3 + $0x48] sm:$0xff]  }
  0x50   : > { %1376 = vmatprep.subr.bf16.mxu0 %v3493_v7  ;;  %1418 = vmatpush1.bf16.msra.mxu1 %v3512_v8  ;;  %v3577_v7 = vld [vmem:[%s4776_s3 + $0x8] sm:$0xff]   ;;  %v3578_v8 = vld [vmem:[%s4776_s3 + $0x40] sm:$0xff]  }
  0x51   : > { %1449 = vmatprep.mubr.bf16.mxu1 %v3799_v13  ;;  %1419 = vmatprep.subr.bf16.mxu1 %v3520_v9  ;;  %v3579_v9 = vld [vmem:[%s4776_s3] sm:$0xff]  }
  0x52   : > { %1406 = vmatprep.mubr.bf16.mxu0 %v3563_v26 }
  0x53   : > { %1377 = vmatpush1.bf16.msra.mxu0 %v3491_v10  ;;  %v682_v10 = vlaneseq }
  0x54   : > { %1378 = vmatprep.subr.bf16.mxu0 %v3496_v11  ;;  %1420 = vmatpush1.bf16.msra.mxu1 %v3518_v12 }
  0x55   : > { %1421 = vmatprep.subr.bf16.mxu1 %v3526_v14  ;;  %v4313_v12 = vshrl.u32 %v682_v10, 7  ;;  %v3583_v10 = vld [vmem:[%s4780_s7 + $0x8] sm:$0xff]  }
  0x57   : > { %1379 = vmatpush1.bf16.msra.mxu0 %v3494_v15 }
  0x58   : > { %1380 = vmatprep.subr.bf16.mxu0 %v3499_v16  ;;  %1422 = vmatpush1.bf16.msra.mxu1 %v3524_v17  ;;  %v4316_v16 = vsub.s32 1, %v4313_v12  ;;  %v680_v17 = vld [vmem:[%s4775_s2] sm:$0x3] }
  0x59   : > { %1423 = vmatprep.subr.bf16.mxu1 %v3532_v18  ;;  %v4322_v18 = vsub.s32 0, %v4313_v12 }
  0x5b   : > { %1381 = vmatpush1.bf16.msra.mxu0 %v3497_v19 }
  0x5c   : > { %1382 = vmatprep.subr.bf16.mxu0 %v3502_v20  ;;  %1424 = vmatpush1.bf16.msra.mxu1 %v3530_v22  ;;  %v685_v22 = vrot.slane %v680_v17, %v4322_v18 }
  0x5d   : > { %1425 = vmatprep.subr.bf16.mxu1 %v3538_v24 }
  0x5f   : > { %1383 = vmatpush1.bf16.msra.mxu0 %v3500_v21  ;;  %v689_v21 = vrot.slane %v680_v17, %v4316_v16 }
  0x60   : > { %1384 = vmatprep.subr.bf16.mxu0 %v3505_v23  ;;  %1426 = vmatpush1.bf16.msra.mxu1 %v3536_v25 }
  0x61   : > { %1427 = vmatprep.subr.bf16.mxu1 %v3544_v27 }
  0x63   : > { %1385 = vmatpush1.bf16.msra.mxu0 %v3503_v28 }
  0x64   : > { %1386 = vmatprep.subr.bf16.mxu0 %v3508_v29  ;;  %1428 = vmatpush1.bf16.msra.mxu1 %v3542_v30 }
  0x65   : > { %1429 = vmatprep.subr.bf16.mxu1 %v3550_v31 }
  0x67   : > { %1387 = vmatpush1.bf16.msra.mxu0 %v3506_v32 }
  0x68   : > { %1388 = vmatprep.subr.bf16.mxu0 %v3511_v33  ;;  %1430 = vmatpush1.bf16.msra.mxu1 %v3548_v34 }
  0x69   : > { %1431 = vmatprep.subr.bf16.mxu1 %v3556_v35 }
  0x6b   : > { %1389 = vmatpush1.bf16.msra.mxu0 %v3509_v36 }
  0x6c   : > { %1390 = vmatprep.subr.bf16.mxu0 %v3517_v37  ;;  %1432 = vmatpush1.bf16.msra.mxu1 %v3554_v38 }
  0x6d   : > { %3288 = vmatprep.subr.bf16.mxu1 %v3564_v58  ;;  %v3580_v58 = vld [vmem:[%s4778_s5 + $0x10] sm:$0xff]  }
  0x6f   : > { %1391 = vmatpush2.bf16.msra.mxu0 %v3515_v41  ;;  %1450 = vmatmul.mubr.bf16.vlgmr.msra.gmra.mxu1 %v3024_v43 }
  0x70   : > { %1392 = vmatprep.subr.bf16.mxu0 %v3523_v42  ;;  %3289 = vmatpush3.bf16.msra.mxu1 %v3565_v59  ;;  %v3800_v59 = vmov 0.0  }
  0x71   : > { %3290 = vmatprep.subr.bf16.mxu1 %v3566_v60  ;;  %v3581_v60 = vld [vmem:[%s4778_s5 + $0x8] sm:$0xff]  }
  0x73   : > { %1393 = vmatpush2.bf16.msra.mxu0 %v3521_v44 }
  0x74   : > { %1394 = vmatprep.subr.bf16.mxu0 %v3529_v45  ;;  %3291 = vmatpush3.bf16.msra.mxu1 %v3567_v61  ;;  %v3582_v61 = vld [vmem:[%s4778_s5] sm:$0xff]  }
  0x75   : > { %3292 = vmatprep.subr.bf16.mxu1 %v3568_v62 }
  0x77   : > { %1395 = vmatpush2.bf16.msra.mxu0 %v3527_v46 }
  0x78   : > { %1396 = vmatprep.subr.bf16.mxu0 %v3535_v47  ;;  %3293 = vmatpush3.bf16.msra.mxu1 %v3569_v63 }
  0x79   : > { %3294 = vmatprep.subr.bf16.mxu1 %v3570_v0  ;;  %v3137_v0 = vld [vmem:[%s4777_s4] ss:$0 sm:$0xff] }
  0x7b   : > { %1397 = vmatpush2.bf16.msra.mxu0 %v3533_v48 }
  0x7c   : > { %1398 = vmatprep.subr.bf16.mxu0 %v3541_v49  ;;  %3295 = vmatpush3.bf16.msra.mxu1 %v3571_v1 }
  0x7d   : > { %3296 = vmatprep.subr.bf16.mxu1 %v3572_v2 }
  0x7f   : > { %1399 = vmatpush2.bf16.msra.mxu0 %v3539_v50 }
  0x80   : > { %1400 = vmatprep.subr.bf16.mxu0 %v3547_v51  ;;  %3297 = vmatpush3.bf16.msra.mxu1 %v3573_v3 }
  0x81   : > { %3298 = vmatprep.subr.bf16.mxu1 %v3574_v4 }
  0x83   : > { %1401 = vmatpush2.bf16.msra.mxu0 %v3545_v52 }
  0x84   : > { %1402 = vmatprep.subr.bf16.mxu0 %v3553_v53  ;;  %3299 = vmatpush3.bf16.msra.mxu1 %v3575_v5 }
  0x85   : > { %3300 = vmatprep.subr.bf16.mxu1 %v3576_v6 }
  0x87   : > { %1403 = vmatpush2.bf16.msra.mxu0 %v3551_v54 }
  0x88   : > { %1404 = vmatprep.subr.bf16.mxu0 %v3559_v55  ;;  %3301 = vmatpush3.bf16.msra.mxu1 %v3577_v7 }
  0x89   : > { %3302 = vmatprep.subr.bf16.mxu1 %v3578_v8 }
  0x8b   : > { %1405 = vmatpush2.bf16.msra.mxu0 %v3557_v56 }
  0x8c   : > { %3303 = vmatpush3.bf16.msra.mxu1 %v3579_v9  ;;  %3341 = vmatprep.subr.bf16.mxu0 %v3800_v59 }
  0x8d   : > { %3359 = vmatprep.subr.bf16.mxu1 %v3800_v59 }
  0x8e   : > { %1407 = vmatmul.mubr.bf16.vlgmr.msra.gmra.mxu0 %v3561_v57 }
  0x8f   : > { %3347 = vmatprep.mubr.msk.bf16.mxu0 %vm3801_vm0, %v3800_v59  ;;  %3342 = vmatpush3.bf16.msra.mxu0 %v3580_v58 }
  0x90   : > { %3343 = vmatprep.subr.bf16.mxu0 %v3800_v59 }
  0x93   : > { %3344 = vmatpush3.bf16.msra.mxu0 %v3581_v60 }
  0x94   : > { %3345 = vmatprep.subr.bf16.mxu0 %v3800_v59 }
  0x97   : > { %3346 = vmatpush3.bf16.msra.mxu0 %v3582_v61 }
  0x98   : > { %3351 = vmatprep.subr.bf16.mxu0 %v3800_v59 }
 0x10e   : > { %v1322_v14 = vpop.f32.mrf.mxu0 }
 0x10f   : > { %v1365_v11 = vpop.f32.mrf.mxu1  ;;  %v1323_v27 = vadd.f32 %v1322_v14, %v685_v22  ;;  %v3154_v14 = vld [vmem:[%s4779_s6] ss:$0 sm:$0xff] }
 0x110   : > { %v1324_v19 = vpop.f32.mrf.mxu0 }
 0x111   : > { %v1367_v15 = vpop.f32.mrf.mxu1  ;;  %v1325_v26 = vadd.f32 %v1324_v19, %v689_v21  ;;  %v1366_v34 = vadd.f32 %v1365_v11, %v1323_v27  ;;  %v3584_v11 = vld [vmem:[%s4780_s7] sm:$0xff]  }
 0x112   : > { %v1326_v23 = vpop.f32.mrf.mxu0 }
 0x113   : > { %v1369_v20 = vpop.f32.mrf.mxu1  ;;  %v1327_v29 = vadd.f32 %v1326_v23, %v685_v22  ;;  %v1368_v32 = vadd.f32 %v1367_v15, %v1325_v26  ;;  %v3159_v26 = vld [vmem:[%s4781_s8] ss:$0 sm:$0xff] }
 0x114   : > { %v1328_v28 = vpop.f32.mrf.mxu0 }
 0x115   : > { %v1371_v24 = vpop.f32.mrf.mxu1  ;;  %v1329_v33 = vadd.f32 %v1328_v28, %v689_v21  ;;  %v1370_v36 = vadd.f32 %v1369_v20, %v1327_v29 }
 0x117   : > { %v1372_v43 = vadd.f32 %v1371_v24, %v1329_v33 }
 0x12f   : > { %v1451_v25 = vpop.f32.mrf.mxu1 }
 0x131   : > { %v1453_v30 = vpop.f32.mrf.mxu1 }
 0x133   : > { %v1455_v41 = vpop.f32.mrf.mxu1 }
 0x135   : > { %v1457_v50 = vpop.f32.mrf.mxu1 }
 0x14e   : > { %v1408_v31 = vpop.f32.mrf.mxu0 }
 0x14f   : > { %v1409_v38 = vadd.f32 %v1408_v31, %v1366_v34 }
 0x150   : > { %v1410_v35 = vpop.f32.mrf.mxu0 }
 0x151   : > { %v1411_v37 = vadd.f32 %v1410_v35, %v1368_v32  ;;  %v1452_v49 = vadd.f32 %v1451_v25, %v1409_v38 }
 0x152   : > { %v1412_v42 = vpop.f32.mrf.mxu0 }
 0x153   : > { %v1454_v44 = vadd.f32 %v1453_v30, %v1411_v37  ;;  %v1413_v45 = vadd.f32 %v1412_v42, %v1370_v36 }
 0x154   : > { %v1414_v46 = vpop.f32.mrf.mxu0 }
 0x155   : > { %v1456_v47 = vadd.f32 %v1455_v41, %v1413_v45  ;;  %v1415_v48 = vadd.f32 %v1414_v46, %v1372_v43  ;;  %3755 = vtanh.f32 %v1454_v44  ;;  %v566_v41 = vunpack.c.l.bf16 %v4212_v39  ;;  %v3585_v39 = vld [vmem:[%s4784_s11] sm:$0xff]  }
 0x156   : > { %v567_v45 = vunpack.c.l.bf16 %v4215_v40  ;;  %v1818_v40 = vld [vmem:[%s4782_s9] sm:$0x3] }
 0x157   : > { %v1458_v51 = vadd.f32 %v1457_v50, %v1415_v48  ;;  %3757 = vtanh.f32 %v1456_v47 }
 0x159   : > { %3759 = vtanh.f32 %v1458_v51  ;;  %v3805_v51 = vmov 17  }
 0x15a   : > { %3761 = vtanh.f32 %v1452_v49 }
 0x162   : > { %v3756_v52 = vpop.eup %3755 }
 0x164   : > { %v3758_v53 = vpop.eup %3757 }
 0x166   : > { %v3760_v54 = vpop.eup %3759 }
 0x167   : > { %v3762_v55 = vpop.eup %3761  ;;  %v1465_v56 = vpack.c.bf16 %v3760_v54, %v3756_v52  ;;  %v1832_v54 = vrot.slane %v1818_v40, %v4322_v18 }
 0x168   : > { %v1464_v57 = vpack.c.bf16 %v3758_v53, %v3762_v55  ;;  %v1846_v53 = vrot.slane %v1818_v40, %v4316_v16  ;;  %v3618_v40 = vld [vmem:[%s4788_s15 + $0xec] ss:$28 sps:$4 sm:$0xff]  }
 0x169   : > { %1633 = vmatprep.mubr.bf16.mxu1 %v1465_v56 }
 0x16a   : > { %1634 = vmatmul.mubr.bf16.vlgmr.msra.gmra.mxu1 %v1464_v57 }
 0x16b   : > { %3361 = vmatprep.mubr.msk.bf16.mxu1 %vm3801_vm0, %v3800_v59  ;;  %3360 = vmatpush3.bf16.msra.mxu1 %v3585_v39  ;;  %v3610_v39 = vld [vmem:[%s4788_s15 + $0x120] ss:$28 sps:$4 sm:$0xff]  }
 0x22a   : > { %v3304_v62 = vpop.f32.mrf.mxu1 }
 0x22c   : > { %v3305_v63 = vpop.f32.mrf.mxu1 }
 0x22d   : > { %v3306_v1 = vadd.f32 %v3305_v63, %v3304_v62 }
 0x22e   : > { %v3307_v2 = vpop.f32.mrf.mxu1 }
 0x22f   : > { %v1636_v3 = vadd.f32 %v3306_v1, %v3137_v0 }
 0x230   : > { %v3308_v4 = vpop.f32.mrf.mxu1 }
 0x231   : > { %v3309_v5 = vadd.f32 %v3308_v4, %v3307_v2  ;;  %3763 = vtanh.f32 %v1636_v3 }
 0x233   : > { %v1639_v6 = vadd.f32 %v3309_v5, %v3137_v0 }
 0x235   : > { %3765 = vtanh.f32 %v1639_v6  ;;  %v3586_v6 = vld [vmem:[%s4786_s13 + $0x20] ss:$8 sps:$4 sm:$0xff]  }
 0x23e   : > { %v3764_v7 = vpop.eup %3763 }
 0x242   : > { %v3766_v8 = vpop.eup %3765 }
 0x243   : > { %v1644_v9 = vpack.c.bf16 %v3766_v8, %v3764_v7  ;;  %v3588_v7 = vld [vmem:[%s4786_s13 + $0x24] ss:$8 sps:$4 sm:$0xff]   ;;  %v3591_v8 = vld [vmem:[%s4786_s13 + $0x14] ss:$8 sps:$4 sm:$0xff]  }
 0x245   : > { %3348 = vmatmul.mubr.msk.bf16.vlgmr.msra.gmra.mxu0 %vm1676_vm1, %v1644_v9  ;;  %v3589_v9 = vld [vmem:[%s4786_s13 + $0x10] ss:$8 sps:$4 sm:$0xff]  }
 0x246   : > { %3355 = vmatprep.mubr.msk.bf16.mxu0 %vm3801_vm0, %v3800_v59  ;;  %3352 = vmatpush3.bf16.msra.mxu0 %v3583_v10  ;;  %v3594_v10 = vld [vmem:[%s4786_s13 + $0x4] ss:$8 sps:$4 sm:$0xff]  }
 0x247   : > { %3353 = vmatprep.subr.bf16.mxu0 %v3800_v59  ;;  %v3163_v59 = vld [vmem:[%s4783_s10] ss:$0 sm:$0xff] }
 0x24a   : > { %3354 = vmatpush3.bf16.msra.mxu0 %v3584_v11  ;;  %v3592_v11 = vld [vmem:[%s4786_s13] ss:$8 sps:$4 sm:$0xff]  }
 0x24b   : > { %1987 = vmatprep.subr.bf16.mxu0 %v3588_v7  ;;  %v3661_v7 = vld [vmem:[%s4788_s15 + $0x2a0] ss:$28 sps:$4 sm:$0xff]  }
 0x305   : > { %v1714_v15 = vpop.f32.mrf.mxu0 }
 0x306   : > { %v1715_v17 = vadd.f32 %v3154_v14, %v1714_v15  ;;  %v3597_v15 = vld [vmem:[%s4788_s15 + $0x18c] ss:$28 sps:$4 sm:$0xff]  }
 0x307   : > { %v3349_v19 = vpop.f32.mrf.mxu0  ;;  %2767 = vmatprep.subr.bf16.mxu1 %v3597_v15  ;;  %v3675_v15 = vld [vmem:[%s4788_s15 + $0x234] ss:$28 sps:$4 sm:$0xff]  }
 0x308   : > { %3767 = vtanh.f32 %v1715_v17  ;;  %v3600_v17 = vld [vmem:[%s4788_s15 + $0x194] ss:$28 sps:$4 sm:$0xff]  }
 0x309   : > { %v1717_v20 = vpop.f32.mrf.mxu0  ;;  %v3603_v19 = vld [vmem:[%s4788_s15 + $0x154] ss:$28 sps:$4 sm:$0xff]  }
 0x30a   : > { %v1718_v21 = vadd.f32 %v3154_v14, %v1717_v20  ;;  %v3595_v14 = vld [vmem:[%s4788_s15 + $0x188] ss:$28 sps:$4 sm:$0xff]   ;;  %v3601_v20 = vld [vmem:[%s4788_s15 + $0x150] ss:$28 sps:$4 sm:$0xff]  }
 0x30b   : > { %v3350_v22 = vpop.f32.mrf.mxu0 }
 0x30c   : > { %3769 = vtanh.f32 %v1718_v21  ;;  %v3609_v21 = vld [vmem:[%s4788_s15 + $0x11c] ss:$28 sps:$4 sm:$0xff]  }
 0x30d   : > { %v3607_v22 = vld [vmem:[%s4788_s15 + $0x118] ss:$28 sps:$4 sm:$0xff]  }
 0x315   : > { %v3768_v23 = vpop.eup %3767 }
 0x319   : > { %v3770_v24 = vpop.eup %3769 }
 0x31a   : > { %v1723_v25 = vpack.c.bf16 %v3770_v24, %v3768_v23  ;;  %v3615_v23 = vld [vmem:[%s4788_s15 + $0xe4] ss:$28 sps:$4 sm:$0xff]  }
 0x31b   : > { %v3613_v24 = vld [vmem:[%s4788_s15 + $0xe0] ss:$28 sps:$4 sm:$0xff]  }
 0x31c   : > { %3356 = vmatmul.mubr.msk.bf16.vlgmr.msra.gmra.mxu0 %vm1747_vm2, %v1723_v25  ;;  %v3621_v25 = vld [vmem:[%s4788_s15 + $0xac] ss:$28 sps:$4 sm:$0xff]  }
 0x31d   : > { %2009 = vmatprep.mubr.bf16.mxu0 %v3799_v13  ;;  %v3803_v13 = vmov 16   ;;  %1988 = vmatpush1.bf16.msra.mxu0 %v3586_v6  ;;  %v3666_v6 = vld [vmem:[%s4788_s15 + $0x2ac] ss:$28 sps:$4 sm:$0xff]  }
 0x31e   : > { %3382 = vset.pattern.permute.xlu0 %v3803_v13  ;;  %3383 = vset.pattern.permute.xlu1 %v3803_v13  ;;  %v3164_v13 = vld [vmem:[%s4785_s12] ss:$0 sm:$0xff] }
 0x31f   : > { %1989 = vmatprep.subr.bf16.mxu0 %v3591_v8  ;;  %v3664_v8 = vld [vmem:[%s4788_s15 + $0x2a8] ss:$28 sps:$4 sm:$0xff]  }
 0x321   : > { %1990 = vmatpush1.bf16.msra.mxu0 %v3589_v9  ;;  %v3669_v9 = vld [vmem:[%s4788_s15 + $0x26c] ss:$28 sps:$4 sm:$0xff]  }
 0x322   : > { %1991 = vmatprep.subr.bf16.mxu0 %v3594_v10  ;;  %v3672_v10 = vld [vmem:[%s4788_s15 + $0x274] ss:$28 sps:$4 sm:$0xff]  }
 0x325   : > { %1992 = vmatpush1.bf16.msra.mxu0 %v3592_v11  ;;  %v3667_v11 = vld [vmem:[%s4788_s15 + $0x268] ss:$28 sps:$4 sm:$0xff]  }
 0x326   : > { %2810 = vmatprep.subr.bf16.mxu0 %v3600_v17  ;;  %v3673_v17 = vld [vmem:[%s4788_s15 + $0x230] ss:$28 sps:$4 sm:$0xff]  }
 0x3dc   : > { %v1785_v27 = vpop.f32.mrf.mxu0 }
 0x3dd   : > { %v1786_v28 = vadd.f32 %v3159_v26, %v1785_v27  ;;  %v3627_v27 = vld [vmem:[%s4788_s15 + $0x74] ss:$28 sps:$4 sm:$0xff]  }
 0x3de   : > { %v3357_v29 = vpop.f32.mrf.mxu0 }
 0x3df   : > { %v1792_v30 = vmul.f32 0.5, %v1786_v28  ;;  %1810 = vrot.lane.b32.xlu1 %v1786_v28, %s3802_s20  ;;  %v3625_v28 = vld [vmem:[%s4788_s15 + $0x70] ss:$28 sps:$4 sm:$0xff]   ;;  %v3633_v29 = vld [vmem:[%s4788_s15 + $0x3c] ss:$28 sps:$4 sm:$0xff]  }
 0x3e0   : > { %v1788_v31 = vpop.f32.mrf.mxu0 }
 0x3e1   : > { %v1794_v32 = vmul.f32 1.442695, %v1792_v30  ;;  %v1789_v33 = vadd.f32 %v3159_v26, %v1788_v31  ;;  %v3619_v26 = vld [vmem:[%s4788_s15 + $0xa8] ss:$28 sps:$4 sm:$0xff]   ;;  %v3631_v30 = vld [vmem:[%s4788_s15 + $0x38] ss:$28 sps:$4 sm:$0xff]  }
 0x3e2   : > { %v3358_v34 = vpop.f32.mrf.mxu0  ;;  %v3639_v31 = vld [vmem:[%s4788_s15 + $0x4] ss:$28 sps:$4 sm:$0xff]  }
 0x3e3   : > { %3771 = vpow2.f32 %v1794_v32  ;;  %v1793_v35 = vmul.f32 0.5, %v1789_v33  ;;  %1812 = vrot.lane.b32.xlu1 %v1789_v33, %s3802_s20  ;;  %v3637_v32 = vld [vmem:[%s4788_s15] ss:$28 sps:$4 sm:$0xff]   ;;  %v3645_v33 = vld [vmem:[%s4788_s15 + $0x34c] ss:$28 sps:$4 sm:$0xff]  }
 0x3e4   : > { %v3643_v34 = vld [vmem:[%s4788_s15 + $0x348] ss:$28 sps:$4 sm:$0xff]  }
 0x3e5   : > { %v1796_v36 = vmul.f32 1.442695, %v1793_v35  ;;  %v3651_v35 = vld [vmem:[%s4788_s15 + $0x314] ss:$28 sps:$4 sm:$0xff]  }
 0x3e7   : > { %3773 = vpow2.f32 %v1796_v36  ;;  %v3649_v36 = vld [vmem:[%s4788_s15 + $0x310] ss:$28 sps:$4 sm:$0xff]  }
 0x3f0   : > { %v3772_v37 = vpop.eup %3771 }
 0x3f1   : > { %1800 = vrot.lane.b32.xlu0 %v3772_v37, %s3804_s18 }
 0x3f4   : > { %v3774_v38 = vpop.eup %3773 }
 0x3f5   : > { %1802 = vrot.lane.b32.xlu0 %v3774_v38, %s3804_s18  ;;  %s4749_s18 = scalar_lea.vmem %s4790_s17, %s3366_s0 }
 0x451   : > { %v1811_v42 = vpop.permute.xlu1 %1810 }
 0x455   : > { %v1813_v49 = vpop.permute.xlu1 %1812 }
 0x463   : > { %v1801_v43 = vpop.permute.xlu0 %1800 }
 0x464   : > { %v1806_v44 = vmul.f32 %v1801_v43, %v566_v41 }
 0x466   : > { %v1816_v46 = vadd.f32 %v1811_v42, %v1806_v44 }
 0x467   : > { %v1803_v47 = vpop.permute.xlu0 %1802 }
 0x468   : > { %v1807_v48 = vmul.f32 %v1803_v47, %v567_v45  ;;  %1821 = vperm.xlu0 %3382, %v1816_v46   ;;  %v3598_v47 = vld [vmem:[%s4788_s15 + $0x190] ss:$28 sps:$4 sm:$0xff]  }
 0x46a   : > { %v1817_v50 = vadd.f32 %v1813_v49, %v1807_v48  ;;  %v3606_v49 = vld [vmem:[%s4788_s15 + $0x15c] ss:$28 sps:$4 sm:$0xff]  }
 0x46c   : > { %3385 = vset.pattern.permute.xlu0 %v3805_v51  ;;  %1826 = vperm.xlu1 %3383, %v1817_v50  }
 0x46d   : > { %1840 = vperm.xlu0 %3385, %v1817_v50   ;;  %v3604_v50 = vld [vmem:[%s4788_s15 + $0x158] ss:$28 sps:$4 sm:$0xff]  }
 0x470   : > { %3384 = vset.pattern.permute.xlu1 %v3805_v51  ;;  %v3612_v51 = vld [vmem:[%s4788_s15 + $0x124] ss:$28 sps:$4 sm:$0xff]  }
 0x471   : > { %1836 = vperm.xlu1 %3384, %v1816_v46  }
 0x4e3   : > { %v1822_v52 = vpop.permute.xlu0 %1821 }
 0x4e4   : > { %v1833_v62 = vmul.f32 %v1832_v54, %v1822_v52  ;;  %v3616_v52 = vld [vmem:[%s4788_s15 + $0xe8] ss:$28 sps:$4 sm:$0xff]  }
 0x4e7   : > { %v1827_v55 = vpop.permute.xlu1 %1826 }
 0x4e8   : > { %v1834_v56 = vmul.f32 %v1832_v54, %v1827_v55  ;;  %v1841_v57 = vpop.permute.xlu0 %1840  ;;  %v3622_v54 = vld [vmem:[%s4788_s15 + $0xb0] ss:$28 sps:$4 sm:$0xff]   ;;  %v3630_v55 = vld [vmem:[%s4788_s15 + $0x7c] ss:$28 sps:$4 sm:$0xff]  }
 0x4e9   : > { %v1848_v58 = vmul.f32 %v1846_v53, %v1841_v57  ;;  %v3636_v57 = vld [vmem:[%s4788_s15 + $0x44] ss:$28 sps:$4 sm:$0xff]  }
 0x4eb   : > { %v1850_v60 = vadd.f32 %v1848_v58, %v1834_v56  ;;  %v3628_v56 = vld [vmem:[%s4788_s15 + $0x78] ss:$28 sps:$4 sm:$0xff]   ;;  %v3634_v58 = vld [vmem:[%s4788_s15 + $0x40] ss:$28 sps:$4 sm:$0xff]  }
 0x4ec   : > { %v1837_v61 = vpop.permute.xlu1 %1836 }
 0x4ed   : > { %v1847_v63 = vmul.f32 %v1846_v53, %v1837_v61  ;;  %v1859_v0 = vadd.f32 %v3163_v59, %v1850_v60  ;;  %v3624_v53 = vld [vmem:[%s4788_s15 + $0xb4] ss:$28 sps:$4 sm:$0xff]   ;;  %v3640_v60 = vld [vmem:[%s4788_s15 + $0x8] ss:$28 sps:$4 sm:$0xff]  }
 0x4ee   : > { %v3648_v61 = vld [vmem:[%s4788_s15 + $0x354] ss:$28 sps:$4 sm:$0xff]  }
 0x4ef   : > { %v1849_v1 = vadd.f32 %v1847_v63, %v1833_v62  ;;  %3775 = vtanh.f32 %v1859_v0  ;;  %v3646_v62 = vld [vmem:[%s4788_s15 + $0x350] ss:$28 sps:$4 sm:$0xff]   ;;  %v3654_v63 = vld [vmem:[%s4788_s15 + $0x31c] ss:$28 sps:$4 sm:$0xff]  }
 0x4f0   : > { %v3652_v0 = vld [vmem:[%s4788_s15 + $0x318] ss:$28 sps:$4 sm:$0xff]  }
 0x4f1   : > { %v1858_v2 = vadd.f32 %v3163_v59, %v1849_v1  ;;  %v3642_v59 = vld [vmem:[%s4788_s15 + $0xc] ss:$28 sps:$4 sm:$0xff]   ;;  %v3657_v1 = vld [vmem:[%s4788_s15 + $0x2dc] ss:$28 sps:$4 sm:$0xff]  }
 0x4f3   : > { %3777 = vtanh.f32 %v1858_v2  ;;  %v3660_v2 = vld [vmem:[%s4788_s15 + $0x2e4] ss:$28 sps:$4 sm:$0xff]  }
 0x4fc   : > { %v3776_v3 = vpop.eup %3775 }
 0x500   : > { %v3778_v4 = vpop.eup %3777 }
 0x501   : > { %v1862_v5 = vpack.c.bf16 %v3776_v3, %v3778_v4  ;;  %v3655_v3 = vld [vmem:[%s4788_s15 + $0x2d8] ss:$28 sps:$4 sm:$0xff]   ;;  %v3658_v4 = vld [vmem:[%s4788_s15 + $0x2e0] ss:$28 sps:$4 sm:$0xff]  }
 0x503   : > { %3362 = vmatmul.mubr.msk.bf16.vlgmr.msra.gmra.mxu1 %vm1878_vm3, %v1862_v5  ;;  %v3663_v5 = vld [vmem:[%s4788_s15 + $0x2a4] ss:$28 sps:$4 sm:$0xff]  }
 0x504   : > { %2768 = vmatpush1.bf16.msra.mxu1 %v3595_v14  ;;  %v3670_v14 = vld [vmem:[%s4788_s15 + $0x270] ss:$28 sps:$4 sm:$0xff]  }
 0x505   : > { %2769 = vmatprep.subr.bf16.mxu1 %v3603_v19  ;;  %v3676_v19 = vld [vmem:[%s4788_s15 + $0x238] ss:$28 sps:$4 sm:$0xff]  }
 0x508   : > { %2770 = vmatpush1.bf16.msra.mxu1 %v3601_v20  ;;  %v3678_v20 = vld [vmem:[%s4788_s15 + $0x23c] ss:$28 sps:$4 sm:$0xff]  }
 0x509   : > { %2771 = vmatprep.subr.bf16.mxu1 %v3609_v21  ;;  %v3681_v21 = vld [vmem:[%s4788_s15 + $0x1fc] ss:$28 sps:$4 sm:$0xff]  }
 0x50c   : > { %2772 = vmatpush1.bf16.msra.mxu1 %v3607_v22  ;;  %v3684_v22 = vld [vmem:[%s4788_s15 + $0x204] ss:$28 sps:$4 sm:$0xff]  }
 0x50d   : > { %2773 = vmatprep.subr.bf16.mxu1 %v3615_v23  ;;  %v3679_v23 = vld [vmem:[%s4788_s15 + $0x1f8] ss:$28 sps:$4 sm:$0xff]  }
 0x510   : > { %2774 = vmatpush1.bf16.msra.mxu1 %v3613_v24  ;;  %v3682_v24 = vld [vmem:[%s4788_s15 + $0x200] ss:$28 sps:$4 sm:$0xff]  }
 0x511   : > { %2775 = vmatprep.subr.bf16.mxu1 %v3621_v25  ;;  %v3687_v25 = vld [vmem:[%s4788_s15 + $0x1c4] ss:$28 sps:$4 sm:$0xff]  }
 0x514   : > { %2776 = vmatpush1.bf16.msra.mxu1 %v3619_v26  ;;  %v3690_v26 = vld [vmem:[%s4788_s15 + $0x1cc] ss:$28 sps:$4 sm:$0xff]  }
 0x515   : > { %2777 = vmatprep.subr.bf16.mxu1 %v3627_v27  ;;  %v3685_v27 = vld [vmem:[%s4788_s15 + $0x1c0] ss:$28 sps:$4 sm:$0xff]  }
 0x518   : > { %2778 = vmatpush1.bf16.msra.mxu1 %v3625_v28  ;;  %v3688_v28 = vld [vmem:[%s4788_s15 + $0x1c8] ss:$28 sps:$4 sm:$0xff]  }
 0x519   : > { %2779 = vmatprep.subr.bf16.mxu1 %v3633_v29  ;;  %v3693_v29 = vld [vmem:[%s4788_s15 + $0x19c] ss:$28 sps:$4 sm:$0xff]  }
 0x51c   : > { %2780 = vmatpush1.bf16.msra.mxu1 %v3631_v30  ;;  %v3694_v30 = vld [vmem:[%s4788_s15 + $0x360] ss:$28 sps:$4 sm:$0xff]  }
 0x51d   : > { %2781 = vmatprep.subr.bf16.mxu1 %v3639_v31  ;;  %v1932_v31 = vld [vmem:[%s4787_s14] sm:$0x3] }
 0x520   : > { %2782 = vmatpush1.bf16.msra.mxu1 %v3637_v32  ;;  %v1941_v32 = vrot.slane %v1932_v31, %v4316_v16 }
 0x521   : > { %2783 = vmatprep.subr.bf16.mxu1 %v3645_v33 }
 0x524   : > { %2784 = vmatpush2.bf16.msra.mxu1 %v3643_v34  ;;  %v1937_v34 = vrot.slane %v1932_v31, %v4322_v18  ;;  %v3754_v31 = vld [vmem:[%s4788_s15 + $0x1d4] ss:$28 sps:$4 sm:$0xff]  }
 0x525   : > { %2785 = vmatprep.subr.bf16.mxu1 %v3651_v35 }
 0x528   : > { %2786 = vmatpush2.bf16.msra.mxu1 %v3649_v36 }
 0x529   : > { %2787 = vmatprep.subr.bf16.mxu1 %v3657_v1  ;;  %v3718_v1 = vld [vmem:[%s4788_s15 + $0x84] ss:$28 sps:$4 sm:$0xff]  }
 0x52c   : > { %2788 = vmatpush2.bf16.msra.mxu1 %v3655_v3  ;;  %v3716_v3 = vld [vmem:[%s4788_s15 + $0x80] ss:$28 sps:$4 sm:$0xff]  }
 0x52d   : > { %2789 = vmatprep.subr.bf16.mxu1 %v3663_v5  ;;  %v3723_v5 = vld [vmem:[%s4788_s15 + $0x4c] ss:$28 sps:$4 sm:$0xff]  }
 0x530   : > { %2790 = vmatpush2.bf16.msra.mxu1 %v3661_v7  ;;  %v3721_v7 = vld [vmem:[%s4788_s15 + $0x48] ss:$28 sps:$4 sm:$0xff]  }
 0x531   : > { %2791 = vmatprep.subr.bf16.mxu1 %v3669_v9  ;;  %v3728_v9 = vld [vmem:[%s4788_s15 + $0x14] ss:$28 sps:$4 sm:$0xff]  }
 0x534   : > { %2792 = vmatpush2.bf16.msra.mxu1 %v3667_v11  ;;  %v3726_v11 = vld [vmem:[%s4788_s15 + $0x10] ss:$28 sps:$4 sm:$0xff]  }
 0x535   : > { %2793 = vmatprep.subr.bf16.mxu1 %v3675_v15  ;;  %v3733_v15 = vld [vmem:[%s4788_s15 + $0x35c] ss:$28 sps:$4 sm:$0xff]  }
 0x538   : > { %2794 = vmatpush2.bf16.msra.mxu1 %v3673_v17  ;;  %v3731_v17 = vld [vmem:[%s4788_s15 + $0x358] ss:$28 sps:$4 sm:$0xff]  }
 0x539   : > { %2795 = vmatprep.subr.bf16.mxu1 %v3681_v21  ;;  %v3739_v21 = vld [vmem:[%s4788_s15 + $0x2ec] ss:$28 sps:$4 sm:$0xff]  }
 0x53c   : > { %2796 = vmatpush2.bf16.msra.mxu1 %v3679_v23  ;;  %v3742_v23 = vld [vmem:[%s4788_s15 + $0x2b4] ss:$28 sps:$4 sm:$0xff]  }
 0x53d   : > { %2797 = vmatprep.subr.bf16.mxu1 %v3687_v25  ;;  %v3745_v25 = vld [vmem:[%s4788_s15 + $0x27c] ss:$28 sps:$4 sm:$0xff]  }
 0x540   : > { %2798 = vmatpush2.bf16.msra.mxu1 %v3685_v27  ;;  %v3748_v27 = vld [vmem:[%s4788_s15 + $0x244] ss:$28 sps:$4 sm:$0xff]  }
 0x541   : > { %2853 = vmatprep.subr.bf16.mxu1 %v3693_v29  ;;  %v3751_v29 = vld [vmem:[%s4788_s15 + $0x20c] ss:$28 sps:$4 sm:$0xff]  }
 0x5c3   : > { %v1916_v37 = vpop.f32.mrf.mxu1 }
 0x5c4   : > { %v1917_v38 = vadd.f32 %v3164_v13, %v1916_v37 }
 0x5c5   : > { %v3363_v41 = vpop.f32.mrf.mxu1 }
 0x5c6   : > { %3779 = vtanh.f32 %v1917_v38 }
 0x5c7   : > { %v1919_v42 = vpop.f32.mrf.mxu1 }
 0x5c8   : > { %v1920_v43 = vadd.f32 %v3164_v13, %v1919_v42 }
 0x5c9   : > { %v3364_v44 = vpop.f32.mrf.mxu1 }
 0x5ca   : > { %3781 = vtanh.f32 %v1920_v43 }
 0x5d3   : > { %v3780_v45 = vpop.eup %3779 }
 0x5d7   : > { %v3782_v46 = vpop.eup %3781 }
 0x5d8   : > { %v1925_v48 = vpack.c.bf16 %v3782_v46, %v3780_v45 }
 0x5da   : > { %3173 = vmatmul.mubr.msk.bf16.vlgmr.msra.gmra.mxu0 %vm1676_vm1, %v1925_v48  ;;  %v3691_v48 = vld [vmem:[%s4788_s15 + $0x198] ss:$28 sps:$4 sm:$0xff]  }
 0x5db   : > { %2811 = vmatpush1.bf16.msra.mxu0 %v3598_v47 }
 0x5dc   : > { %2812 = vmatprep.subr.bf16.mxu0 %v3606_v49  ;;  %v3695_v49 = vld [vmem:[%s4788_s15 + $0x1a0] ss:$28 sps:$4 sm:$0xff]  }
 0x5df   : > { %2813 = vmatpush1.bf16.msra.mxu0 %v3604_v50 }
 0x5e0   : > { %2814 = vmatprep.subr.bf16.mxu0 %v3612_v51  ;;  %v3698_v51 = vld [vmem:[%s4788_s15 + $0x164] ss:$28 sps:$4 sm:$0xff]  }
 0x5e3   : > { %2815 = vmatpush1.bf16.msra.mxu0 %v3610_v39  ;;  %v3699_v39 = vld [vmem:[%s4788_s15 + $0x328] ss:$28 sps:$4 sm:$0xff]  }
 0x5e4   : > { %2816 = vmatprep.subr.bf16.mxu0 %v3618_v40  ;;  %v3696_v40 = vld [vmem:[%s4788_s15 + $0x160] ss:$28 sps:$4 sm:$0xff]  }
 0x5e7   : > { %2817 = vmatpush1.bf16.msra.mxu0 %v3616_v52  ;;  %v3700_v52 = vld [vmem:[%s4788_s15 + $0x168] ss:$28 sps:$4 sm:$0xff]  }
 0x5e8   : > { %2818 = vmatprep.subr.bf16.mxu0 %v3624_v53  ;;  %v3703_v53 = vld [vmem:[%s4788_s15 + $0x12c] ss:$28 sps:$4 sm:$0xff]  }
 0x5eb   : > { %2819 = vmatpush1.bf16.msra.mxu0 %v3622_v54  ;;  %v3704_v54 = vld [vmem:[%s4788_s15 + $0x2f0] ss:$28 sps:$4 sm:$0xff]  }
 0x5ec   : > { %2820 = vmatprep.subr.bf16.mxu0 %v3630_v55  ;;  %v3701_v55 = vld [vmem:[%s4788_s15 + $0x128] ss:$28 sps:$4 sm:$0xff]  }
 0x5ef   : > { %2821 = vmatpush1.bf16.msra.mxu0 %v3628_v56  ;;  %v3705_v56 = vld [vmem:[%s4788_s15 + $0x130] ss:$28 sps:$4 sm:$0xff]  }
 0x5f0   : > { %2822 = vmatprep.subr.bf16.mxu0 %v3636_v57  ;;  %v3708_v57 = vld [vmem:[%s4788_s15 + $0xf4] ss:$28 sps:$4 sm:$0xff]  }
 0x5f3   : > { %2823 = vmatpush1.bf16.msra.mxu0 %v3634_v58  ;;  %v3709_v58 = vld [vmem:[%s4788_s15 + $0x2b8] ss:$28 sps:$4 sm:$0xff]  }
 0x5f4   : > { %2824 = vmatprep.subr.bf16.mxu0 %v3642_v59  ;;  %v3706_v59 = vld [vmem:[%s4788_s15 + $0xf0] ss:$28 sps:$4 sm:$0xff]  }
 0x5f7   : > { %2825 = vmatpush1.bf16.msra.mxu0 %v3640_v60  ;;  %v3710_v60 = vld [vmem:[%s4788_s15 + $0xf8] ss:$28 sps:$4 sm:$0xff]  }
 0x5f8   : > { %2826 = vmatprep.subr.bf16.mxu0 %v3648_v61  ;;  %v3713_v61 = vld [vmem:[%s4788_s15 + $0xbc] ss:$28 sps:$4 sm:$0xff]  }
 0x5fb   : > { %2827 = vmatpush2.bf16.msra.mxu0 %v3646_v62  ;;  %v3714_v62 = vld [vmem:[%s4788_s15 + $0x280] ss:$28 sps:$4 sm:$0xff]  }
 0x5fc   : > { %2828 = vmatprep.subr.bf16.mxu0 %v3654_v63  ;;  %v3711_v63 = vld [vmem:[%s4788_s15 + $0xb8] ss:$28 sps:$4 sm:$0xff]  }
 0x5ff   : > { %2829 = vmatpush2.bf16.msra.mxu0 %v3652_v0  ;;  %v3715_v0 = vld [vmem:[%s4788_s15 + $0xc0] ss:$28 sps:$4 sm:$0xff]  }
 0x600   : > { %2830 = vmatprep.subr.bf16.mxu0 %v3660_v2  ;;  %v3719_v2 = vld [vmem:[%s4788_s15 + $0x248] ss:$28 sps:$4 sm:$0xff]  }
 0x603   : > { %2831 = vmatpush2.bf16.msra.mxu0 %v3658_v4  ;;  %v3720_v4 = vld [vmem:[%s4788_s15 + $0x88] ss:$28 sps:$4 sm:$0xff]  }
 0x604   : > { %2832 = vmatprep.subr.bf16.mxu0 %v3666_v6  ;;  %v3724_v6 = vld [vmem:[%s4788_s15 + $0x210] ss:$28 sps:$4 sm:$0xff]  }
 0x607   : > { %2833 = vmatpush2.bf16.msra.mxu0 %v3664_v8  ;;  %v3725_v8 = vld [vmem:[%s4788_s15 + $0x50] ss:$28 sps:$4 sm:$0xff]  }
 0x608   : > { %2834 = vmatprep.subr.bf16.mxu0 %v3672_v10  ;;  %v3729_v10 = vld [vmem:[%s4788_s15 + $0x1d8] ss:$28 sps:$4 sm:$0xff]  }
 0x60b   : > { %2835 = vmatpush2.bf16.msra.mxu0 %v3670_v14  ;;  %v3730_v14 = vld [vmem:[%s4788_s15 + $0x18] ss:$28 sps:$4 sm:$0xff]  }
 0x60c   : > { %2836 = vmatprep.subr.bf16.mxu0 %v3678_v20  ;;  %v3734_v20 = vld [vmem:[%s4788_s15 + $0x320] ss:$28 sps:$4 sm:$0xff]  }
 0x60f   : > { %2837 = vmatpush2.bf16.msra.mxu0 %v3676_v19  ;;  %v3736_v19 = vld [vmem:[%s4788_s15 + $0x324] ss:$28 sps:$4 sm:$0xff]  }
 0x610   : > { %2838 = vmatprep.subr.bf16.mxu0 %v3684_v22  ;;  %v3737_v22 = vld [vmem:[%s4788_s15 + $0x2e8] ss:$28 sps:$4 sm:$0xff]  }
 0x613   : > { %2839 = vmatpush2.bf16.msra.mxu0 %v3682_v24  ;;  %v3740_v24 = vld [vmem:[%s4788_s15 + $0x2b0] ss:$28 sps:$4 sm:$0xff]  }
 0x614   : > { %2840 = vmatprep.subr.bf16.mxu0 %v3690_v26  ;;  %v3743_v26 = vld [vmem:[%s4788_s15 + $0x278] ss:$28 sps:$4 sm:$0xff]  }
 0x617   : > { %2841 = vmatpush2.bf16.msra.mxu0 %v3688_v28  ;;  %v3746_v28 = vld [vmem:[%s4788_s15 + $0x240] ss:$28 sps:$4 sm:$0xff]  }
 0x618   : > { %3319 = vmatprep.subr.bf16.mxu0 %v3694_v30  ;;  %v3749_v30 = vld [vmem:[%s4788_s15 + $0x208] ss:$28 sps:$4 sm:$0xff]  }
 0x69a   : > { %v2011_v33 = vpop.f32.mrf.mxu0 }
 0x69b   : > { %v2012_v38 = vadd.f32 %v2011_v33, %v1937_v34  ;;  %v2166_v33 = vsub.s32 2, %v4313_v12 }
 0x69c   : > { %v2013_v35 = vpop.f32.mrf.mxu0 }
 0x69d   : > { %v2014_v36 = vadd.f32 %v2013_v35, %v1941_v32  ;;  %v2170_v35 = vsub.s32 3, %v4313_v12 }
 0x69e   : > { %v2015_v13 = vpop.f32.mrf.mxu0 }
 0x69f   : > { %v2016_v37 = vadd.f32 %v2015_v13, %v1937_v34  ;;  %3783 = vtanh.f32 %v2014_v36  ;;  %v2154_v34 = vld [vmem:[%s4789_s16] sm:$0x7f] }
 0x6a0   : > { %v2017_v41 = vpop.f32.mrf.mxu0  ;;  %v2159_v36 = vrot.slane %v2154_v34, %v4322_v18  ;;  %v2167_v13 = vrot.slane %v2154_v34, %v2166_v33 }
 0x6a1   : > { %v2018_v42 = vadd.f32 %v2017_v41, %v1941_v32  ;;  %3785 = vtanh.f32 %v2016_v37  ;;  %v3752_v32 = vld [vmem:[%s4788_s15 + $0x1d0] ss:$28 sps:$4 sm:$0xff]   ;;  %v2163_v37 = vrot.slane %v2154_v34, %v4316_v16 }
 0x6a3   : > { %3787 = vtanh.f32 %v2018_v42 }
 0x6a4   : > { %3789 = vtanh.f32 %v2012_v38  ;;  %v2171_v38 = vrot.slane %v2154_v34, %v2170_v35 }
 0x6ac   : > { %v3784_v43 = vpop.eup %3783 }
 0x6ae   : > { %v3786_v44 = vpop.eup %3785 }
 0x6b0   : > { %v3788_v45 = vpop.eup %3787 }
 0x6b1   : > { %v3790_v46 = vpop.eup %3789  ;;  %v2025_v47 = vpack.c.bf16 %v3788_v45, %v3784_v43 }
 0x6b2   : > { %v4600_v50 = vpack.c.bf16 %v3786_v44, %v3790_v46 }
 0x6b3   : > { %2799 = vmatprep.mubr.bf16.mxu1 %v2025_v47  ;;  %2842 = vmatprep.mubr.bf16.mxu0 %v2025_v47 }
 0x6b4   : > { %2800 = vmatmul.mubr.bf16.vlgmr.msra.gmra.mxu1 %v4600_v50  ;;  %2843 = vmatmul.mubr.bf16.vlgmr.msra.gmra.mxu0 %v4600_v50 }
 0x6b5   : > { %2854 = vmatpush1.bf16.msra.mxu1 %v3691_v48  ;;  %3320 = vmatpush3.bf16.msra.mxu0 %v3695_v49 }
 0x6b6   : > { %2885 = vmatprep.mubr.bf16.mxu1 %v2025_v47  ;;  %2928 = vmatprep.mubr.bf16.mxu0 %v2025_v47 }
 0x6b7   : > { %2855 = vmatprep.subr.bf16.mxu1 %v3698_v51  ;;  %3321 = vmatprep.subr.bf16.mxu0 %v3699_v39 }
 0x6b9   : > { %2856 = vmatpush1.bf16.msra.mxu1 %v3696_v40  ;;  %3322 = vmatpush3.bf16.msra.mxu0 %v3700_v52 }
 0x6ba   : > { %2857 = vmatprep.subr.bf16.mxu1 %v3703_v53  ;;  %3323 = vmatprep.subr.bf16.mxu0 %v3704_v54  ;;  %v2182_v53 = vsub.s32 6, %v4313_v12 }
 0x6bd   : > { %2858 = vmatpush1.bf16.msra.mxu1 %v3701_v55  ;;  %3324 = vmatpush3.bf16.msra.mxu0 %v3705_v56  ;;  %v2183_v55 = vrot.slane %v2154_v34, %v2182_v53 }
 0x6be   : > { %2859 = vmatprep.subr.bf16.mxu1 %v3708_v57  ;;  %3325 = vmatprep.subr.bf16.mxu0 %v3709_v58 }
 0x6c1   : > { %2860 = vmatpush1.bf16.msra.mxu1 %v3706_v59  ;;  %3326 = vmatpush3.bf16.msra.mxu0 %v3710_v60 }
 0x6c2   : > { %2861 = vmatprep.subr.bf16.mxu1 %v3713_v61  ;;  %3327 = vmatprep.subr.bf16.mxu0 %v3714_v62 }
 0x6c5   : > { %2862 = vmatpush1.bf16.msra.mxu1 %v3711_v63  ;;  %3328 = vmatpush3.bf16.msra.mxu0 %v3715_v0  ;;  %v2174_v63 = vsub.s32 4, %v4313_v12  ;;  %v2178_v0 = vsub.s32 5, %v4313_v12 }
 0x6c6   : > { %2863 = vmatprep.subr.bf16.mxu1 %v3718_v1  ;;  %3329 = vmatprep.subr.bf16.mxu0 %v3719_v2 }
 0x6c7   : > { %v2175_v1 = vrot.slane %v2154_v34, %v2174_v63  ;;  %v2179_v2 = vrot.slane %v2154_v34, %v2178_v0 }
 0x6c9   : > { %2864 = vmatpush1.bf16.msra.mxu1 %v3716_v3  ;;  %3330 = vmatpush3.bf16.msra.mxu0 %v3720_v4 }
 0x6ca   : > { %2865 = vmatprep.subr.bf16.mxu1 %v3723_v5  ;;  %3331 = vmatprep.subr.bf16.mxu0 %v3724_v6 }
 0x6cd   : > { %2866 = vmatpush1.bf16.msra.mxu1 %v3721_v7  ;;  %3332 = vmatpush3.bf16.msra.mxu0 %v3725_v8 }
 0x6ce   : > { %2867 = vmatprep.subr.bf16.mxu1 %v3728_v9  ;;  %3333 = vmatprep.subr.bf16.mxu0 %v3729_v10 }
 0x6d1   : > { %2868 = vmatpush1.bf16.msra.mxu1 %v3726_v11  ;;  %3334 = vmatpush3.bf16.msra.mxu0 %v3730_v14 }
 0x6d2   : > { %2869 = vmatprep.subr.bf16.mxu1 %v3733_v15 }
 0x6d4   : > { %2929 = vmatmul.mubr.bf16.vlgmr.msra.gmra.mxu0 %v4600_v50 }
 0x6d5   : > { %2870 = vmatpush2.bf16.msra.mxu1 %v3731_v17 }
 0x6d6   : > { %2871 = vmatprep.subr.bf16.mxu1 %v3736_v19 }
 0x6d9   : > { %2872 = vmatpush2.bf16.msra.mxu1 %v3734_v20 }
 0x6da   : > { %2873 = vmatprep.subr.bf16.mxu1 %v3739_v21 }
 0x6dd   : > { %2874 = vmatpush2.bf16.msra.mxu1 %v3737_v22 }
 0x6de   : > { %2875 = vmatprep.subr.bf16.mxu1 %v3742_v23 }
 0x6e1   : > { %2876 = vmatpush2.bf16.msra.mxu1 %v3740_v24 }
 0x6e2   : > { %2877 = vmatprep.subr.bf16.mxu1 %v3745_v25 }
 0x6e5   : > { %2878 = vmatpush2.bf16.msra.mxu1 %v3743_v26 }
 0x6e6   : > { %2879 = vmatprep.subr.bf16.mxu1 %v3748_v27 }
 0x6e9   : > { %2880 = vmatpush2.bf16.msra.mxu1 %v3746_v28 }
 0x6ea   : > { %2881 = vmatprep.subr.bf16.mxu1 %v3751_v29 }
 0x6ed   : > { %2882 = vmatpush2.bf16.msra.mxu1 %v3749_v30 }
 0x6ee   : > { %2883 = vmatprep.subr.bf16.mxu1 %v3754_v31 }
 0x6f1   : > { %2884 = vmatpush2.bf16.msra.mxu1 %v3752_v32 }
 0x6f4   : > { %2886 = vmatmul.mubr.bf16.vlgmr.msra.gmra.mxu1 %v4600_v50 }
 0x774   : > { %v2801_v41 = vpop.f32.mrf.mxu1  ;;  %v2844_v42 = vpop.f32.mrf.mxu0 }
 0x775   : > { %v2802_v43 = vadd.f32 %v2801_v41, %v2159_v36  ;;  %v2845_v44 = vadd.f32 %v2844_v42, %v2167_v13 }
 0x776   : > { %v2803_v18 = vpop.f32.mrf.mxu1  ;;  %v2846_v45 = vpop.f32.mrf.mxu0 }
 0x777   : > { %2937 = vst [vmem:[%s4749_s18] sm:$0xff] %v2802_v43  ;;  %2939 = vst [vmem:[%s4749_s18 + $0x10] sm:$0xff] %v2845_v44  ;;  %v2804_v16 = vadd.f32 %v2803_v18, %v2163_v37  ;;  %v2847_v46 = vadd.f32 %v2846_v45, %v2171_v38 }
 0x778   : > { %v2805_v47 = vpop.f32.mrf.mxu1  ;;  %v2848_v48 = vpop.f32.mrf.mxu0 }
 0x779   : > { %2938 = vst [vmem:[%s4749_s18 + $0x8] sm:$0xff] %v2804_v16  ;;  %2940 = vst [vmem:[%s4749_s18 + $0x18] sm:$0xff] %v2847_v46  ;;  %v2806_v49 = vadd.f32 %v2805_v47, %v2159_v36  ;;  %v2849_v50 = vadd.f32 %v2848_v48, %v2167_v13 }
 0x77a   : > { %v2807_v51 = vpop.f32.mrf.mxu1  ;;  %v2850_v39 = vpop.f32.mrf.mxu0 }
 0x77b   : > { %2944 = vst [vmem:[%s4749_s18 + $0x38] sm:$0xff] %v2806_v49  ;;  %2946 = vst [vmem:[%s4749_s18 + $0x48] sm:$0xff] %v2849_v50  ;;  %v2808_v40 = vadd.f32 %v2807_v51, %v2163_v37  ;;  %v2851_v52 = vadd.f32 %v2850_v39, %v2171_v38 }
 0x77d   : > { %2945 = vst [vmem:[%s4749_s18 + $0x40] sm:$0xff] %v2808_v40  ;;  %2947 = vst [vmem:[%s4749_s18 + $0x50] sm:$0xff] %v2851_v52 }
 0x794   : > { %v3335_v54 = vpop.f32.mrf.mxu0 }
 0x796   : > { %v3336_v56 = vpop.f32.mrf.mxu0 }
 0x797   : > { %v3337_v57 = vadd.f32 %v3336_v56, %v3335_v54 }
 0x798   : > { %v3338_v58 = vpop.f32.mrf.mxu0 }
 0x799   : > { %v2931_v59 = vadd.f32 %v3337_v57, %v2183_v55 }
 0x79a   : > { %v3339_v60 = vpop.f32.mrf.mxu0 }
 0x79b   : > { %2943 = vst.msk [vmem:[%s4749_s18 + $0x30] sm:$0xff] %vm1878_vm3, %v2931_v59  ;;  %v3340_v61 = vadd.f32 %v3339_v60, %v3338_v58 }
 0x79d   : > { %v2934_v62 = vadd.f32 %v3340_v61, %v2183_v55 }
 0x79f   : > { %2950 = vst.msk [vmem:[%s4749_s18 + $0x68] sm:$0xff] %vm1878_vm3, %v2934_v62 }
 0x7b4   : > { %v2887_v3 = vpop.f32.mrf.mxu1 }
 0x7b5   : > { %v2888_v4 = vadd.f32 %v2887_v3, %v2175_v1 }
 0x7b6   : > { %v2889_v5 = vpop.f32.mrf.mxu1 }
 0x7b7   : > { %2941 = vst [vmem:[%s4749_s18 + $0x20] sm:$0xff] %v2888_v4  ;;  %v2890_v6 = vadd.f32 %v2889_v5, %v2179_v2 }
 0x7b8   : > { %v2891_v7 = vpop.f32.mrf.mxu1 }
 0x7b9   : > { %2942 = vst [vmem:[%s4749_s18 + $0x28] sm:$0xff] %v2890_v6  ;;  %v2892_v8 = vadd.f32 %v2891_v7, %v2175_v1 }
 0x7ba   : > { %v2893_v9 = vpop.f32.mrf.mxu1 }
 0x7bb   : > { %2948 = vst [vmem:[%s4749_s18 + $0x58] sm:$0xff] %v2892_v8  ;;  %v2894_v10 = vadd.f32 %v2893_v9, %v2179_v2 }
 0x7bd   : > { %2949 = vst [vmem:[%s4749_s18 + $0x60] sm:$0xff] %v2894_v10 }
 0x7be PF: > { %s27_s24 = sadd.s32 1, %s3797_s24  }
 0x7bf   : > { %p24_p4 = scmp.ge.s32.totalorder %s27_s24, 4  }
 0x7c1   :  { %26 = sbr.rel (!%p24_p4) target bundleno = 3 (0x3), region = 118 }

</bundles_post_ra>
